<compile_context>
chip_gen: v5e
topology: v5e:2x2
jax: 0.10.0
libtpu: 0.0.40
codegen_flags: <defaults>
</compile_context>

<pallas_src>
import functools
import math

import jax
import jax.numpy as jnp
from jax.experimental import pallas as pl
from jax.experimental.pallas import tpu as pltpu


def _layer_norm(x, gamma, beta, eps=1e-5):
    mu = jnp.mean(x, axis=-1, keepdims=True)
    var = jnp.mean((x - mu) ** 2, axis=-1, keepdims=True)
    return (x - mu) * jax.lax.rsqrt(var + eps) * gamma + beta


def _block_kernel(x_ref,
                  ln1g_ref, ln1b_ref,
                  wqkv_ref, bqkv_ref,
                  wo_ref, bo_ref,
                  ln2g_ref, ln2b_ref,
                  wfc_ref, bfc_ref,
                  wproj_ref, bproj_ref,
                  o_ref,
                  *, d_model, n_head, b_blk, seq_len):
    head_dim = d_model // n_head
    m_rows = b_blk * seq_len

    x = x_ref[...].reshape(m_rows, d_model)                       # (M, D) f32

    # ---- attention branch: x + out_proj(MHA(LN1(x))) ----
    xn = _layer_norm(x, ln1g_ref[0], ln1b_ref[0])
    qkv = jnp.dot(xn.astype(jnp.bfloat16), wqkv_ref[...],
                  preferred_element_type=jnp.float32) + bqkv_ref[0]   # (M, 3D) f32
    # 1/sqrt(head_dim) already folded into the Q weights/bias in prepare_params.
    # QKV splits are at D-aligned (multiple-of-128) lane offsets -> cheap.
    q = qkv[:, 0 * d_model:1 * d_model].astype(jnp.bfloat16).reshape(b_blk, seq_len, d_model)
    k = qkv[:, 1 * d_model:2 * d_model].astype(jnp.bfloat16).reshape(b_blk, seq_len, d_model)
    v = qkv[:, 2 * d_model:3 * d_model].astype(jnp.bfloat16).reshape(b_blk, seq_len, d_model)

    ctx_heads = []
    for h in range(n_head):                                        # static head loop
        sl = slice(h * head_dim, (h + 1) * head_dim)
        qh = q[:, :, sl]                                           # (B, L, hd) bf16
        kh = k[:, :, sl]
        vh = v[:, :, sl]
        # Scores without an explicit K transpose; batched over the B_blk axis.
        s = jnp.einsum('bld,bmd->blm', qh, kh,
                       preferred_element_type=jnp.float32)         # (B, L, L) f32
        s = s - jnp.max(s, axis=-1, keepdims=True)
        p = jnp.exp(s)
        p = p * pl.reciprocal(jnp.sum(p, axis=-1, keepdims=True), approx=True)
        ctx_heads.append(
            jnp.einsum('blm,bmd->bld', p.astype(jnp.bfloat16), vh,
                       preferred_element_type=jnp.float32))        # (B, L, hd) f32
    # Build the full context in-register (no VMEM scratch round-trip).
    ctx = jnp.concatenate(ctx_heads, axis=-1).reshape(m_rows, d_model)

    attn = jnp.dot(ctx.astype(jnp.bfloat16), wo_ref[...],
                   preferred_element_type=jnp.float32) + bo_ref[0]  # (M, D) f32
    x = x + attn

    # ---- MLP branch: x + c_proj(QuickGELU(c_fc(LN2(x)))) ----
    xn2 = _layer_norm(x, ln2g_ref[0], ln2b_ref[0])
    hdd = jnp.dot(xn2.astype(jnp.bfloat16), wfc_ref[...],
                  preferred_element_type=jnp.float32) + bfc_ref[0]   # (M, 4D) f32
    hdd = hdd * jax.nn.sigmoid(1.702 * hdd)                          # QuickGELU, f32
    y = jnp.dot(hdd.astype(jnp.bfloat16), wproj_ref[...],
                preferred_element_type=jnp.float32) + bproj_ref[0]   # (M, D) f32

    o_ref[...] = (x + y).reshape(b_blk, seq_len, d_model)


def _vmem_budget_bytes():
    """Generation-aware scoped-VMEM cap (~80% of physical per-core VMEM)."""
    cap = 64 * 1024 * 1024   # conservative default (v7x-class)
    try:
        info = pltpu.get_tpu_info()
        cap = int(getattr(info, "vmem_capacity_bytes", cap))
    except Exception:
        pass
    return max(int(cap * 0.8), 32 * 1024 * 1024)


def _choose_batch_block(n_batch, seq_len, target_rows=256):
    """Largest divisor of N with B_blk*L <= ~256 rows; prefer >=2 grid steps
    (v7x dual TensorCore) when that still keeps >=128 rows per step."""
    best = 1
    for b in range(1, n_batch + 1):
        if n_batch % b == 0 and b * seq_len <= max(target_rows, seq_len):
            best = b
    if best == n_batch and n_batch > 1:
        for b in range(best - 1, 0, -1):
            if n_batch % b == 0 and b * seq_len >= 128:
                best = b
                break
    return best


def prepare_params(params, *, d_model, n_head):
    """One-time host-side weight prep (hoisted out of the per-call path):
    transpose Linear weights so the kernel computes x @ W, fold 1/sqrt(head_dim)
    into the Q part of the fused in-projection, cast matmul weights to bf16."""
    head_dim = d_model // n_head
    scale = 1.0 / math.sqrt(head_dim)

    wqkv = jnp.asarray(params["in_proj_weight"], jnp.float32).T            # (D, 3D)
    wqkv = wqkv.at[:, :d_model].multiply(scale).astype(jnp.bfloat16)
    bqkv = jnp.asarray(params["in_proj_bias"], jnp.float32).at[:d_model].multiply(scale)

    return {
        "ln1g": jnp.asarray(params["ln1_gamma"], jnp.float32)[None, :],
        "ln1b": jnp.asarray(params["ln1_beta"], jnp.float32)[None, :],
        "wqkv": wqkv,
        "bqkv": bqkv[None, :].astype(jnp.float32),
        "wo": jnp.asarray(params["out_proj_weight"], jnp.float32).T.astype(jnp.bfloat16),
        "bo": jnp.asarray(params["out_proj_bias"], jnp.float32)[None, :],
        "ln2g": jnp.asarray(params["ln2_gamma"], jnp.float32)[None, :],
        "ln2b": jnp.asarray(params["ln2_beta"], jnp.float32)[None, :],
        "wfc": jnp.asarray(params["c_fc_weight"], jnp.float32).T.astype(jnp.bfloat16),
        "bfc": jnp.asarray(params["c_fc_bias"], jnp.float32)[None, :],
        "wproj": jnp.asarray(params["c_proj_weight"], jnp.float32).T.astype(jnp.bfloat16),
        "bproj": jnp.asarray(params["c_proj_bias"], jnp.float32)[None, :],
    }


def _const_spec(shape):
    # Grid-invariant operand: constant index_map, so Pallas fetches it once.
    return pl.BlockSpec(shape, lambda b: (0, 0))


def residual_attention_block(x_lnd, prepped, *, d_model, n_head):
    """x_lnd: (L, N, D) float32, prepped = prepare_params(...). Returns (L, N, D)."""
    L, N, D = x_lnd.shape
    assert D == d_model and d_model % n_head == 0

    b_blk = _choose_batch_block(N, L)
    grid = (N // b_blk,)
    m_rows = b_blk * L

    # Glue: batch-major for BlockSpec tiling.
    x_nld = jnp.transpose(x_lnd, (1, 0, 2)).astype(jnp.float32)

    const_args = (prepped["ln1g"], prepped["ln1b"],
                  prepped["wqkv"], prepped["bqkv"],
                  prepped["wo"], prepped["bo"],
                  prepped["ln2g"], prepped["ln2b"],
                  prepped["wfc"], prepped["bfc"],
                  prepped["wproj"], prepped["bproj"])

    # Scoped-VMEM estimate (conservative: pipelined operands counted with 2 bufs).
    bf16_weight_bytes = sum(int(prepped[k].size)
                            for k in ("wqkv", "wo", "wfc", "wproj")) * 2
    small_bytes = sum(int(prepped[k].size)
                      for k in ("bqkv", "bo", "bfc", "bproj",
                                "ln1g", "ln1b", "ln2g", "ln2b")) * 4
    act_bytes = 2 * 2 * m_rows * D * 4                    # x + out blocks, double-buffered
    inter_elems = (m_rows * 3 * D                          # fused qkv (f32)
                   + 3 * m_rows * D                        # q/k/v copies
                   + 2 * b_blk * L * L                     # scores + probs
                   + m_rows * D                            # attention context
                   + 2 * m_rows * 4 * D                    # MLP hidden + temporaries
                   + 4 * m_rows * D)                       # residual / LN temporaries
    est = 2 * bf16_weight_bytes + 2 * small_bytes + act_bytes + inter_elems * 4
    vmem_limit = int(min(max(2 * est, 32 * 1024 * 1024), _vmem_budget_bytes()))

    kernel = functools.partial(_block_kernel, d_model=d_model, n_head=n_head,
                               b_blk=b_blk, seq_len=L)

    out_nld = pl.pallas_call(
        kernel,
        out_shape=jax.ShapeDtypeStruct((N, L, D), jnp.float32),
        grid_spec=pltpu.PrefetchScalarGridSpec(
            num_scalar_prefetch=0,
            grid=grid,
            in_specs=[pl.BlockSpec((b_blk, L, D), lambda b: (b, 0, 0))]
                     + [_const_spec(a.shape) for a in const_args],
            out_specs=pl.BlockSpec((b_blk, L, D), lambda b: (b, 0, 0)),
        ),
        compiler_params=pltpu.CompilerParams(
            dimension_semantics=("parallel",),
            vmem_limit_bytes=vmem_limit),
    )(x_nld, *const_args)

    return jnp.transpose(out_nld, (1, 0, 2))              # back to (L, N, D)


# ---------------- pure-JAX reference (for verification, f32) ----------------
def _reference(x_lnd, params, *, d_model, n_head):
    head_dim = d_model // n_head
    scale = 1.0 / math.sqrt(head_dim)
    L, N, D = x_lnd.shape

    def ln(v, g, b):
        mu = jnp.mean(v, -1, keepdims=True)
        var = jnp.mean((v - mu) ** 2, -1, keepdims=True)
        return (v - mu) / jnp.sqrt(var + 1e-5) * g + b

    x = x_lnd
    xn = ln(x, params["ln1_gamma"], params["ln1_beta"])
    qkv = xn @ params["in_proj_weight"].T + params["in_proj_bias"]
    q, k, v = jnp.split(qkv, 3, axis=-1)
    rs = lambda t: jnp.transpose(t.reshape(L, N, n_head, head_dim), (1, 2, 0, 3))
    qh, kh, vh = rs(q) * scale, rs(k), rs(v)
    s = jnp.einsum("nhld,nhmd->nhlm", qh, kh)
    p = jax.nn.softmax(s, axis=-1)
    o = jnp.einsum("nhlm,nhmd->nhld", p, vh)
    o = jnp.transpose(o, (2, 0, 1, 3)).reshape(L, N, D)
    o = o @ params["out_proj_weight"].T + params["out_proj_bias"]
    x = x + o
    xn2 = ln(x, params["ln2_gamma"], params["ln2_beta"])
    h = xn2 @ params["c_fc_weight"].T + params["c_fc_bias"]
    h = h * jax.nn.sigmoid(1.702 * h)
    y = h @ params["c_proj_weight"].T + params["c_proj_bias"]
    return x + y


if __name__ == "__main__":
    # Small but lane-dense: D is a multiple of 128 so tiling is exercised.
    L, N, D, H = 16, 2, 128, 4     # seq, batch, d_model, n_head

    key = jax.random.PRNGKey(0)
    ks = jax.random.split(key, 9)
    init = lambda k, shape, s=0.05: (s * jax.random.normal(k, shape)).astype(jnp.float32)

    params = {
        "ln1_gamma": jnp.ones((D,), jnp.float32),
        "ln1_beta": jnp.zeros((D,), jnp.float32),
        "in_proj_weight": init(ks[0], (3 * D, D)),
        "in_proj_bias": init(ks[1], (3 * D,)),
        "out_proj_weight": init(ks[2], (D, D)),
        "out_proj_bias": init(ks[3], (D,)),
        "ln2_gamma": jnp.ones((D,), jnp.float32),
        "ln2_beta": jnp.zeros((D,), jnp.float32),
        "c_fc_weight": init(ks[4], (4 * D, D)),
        "c_fc_bias": init(ks[5], (4 * D,)),
        "c_proj_weight": init(ks[6], (D, 4 * D)),
        "c_proj_bias": init(ks[7], (D,)),
    }

    x = jax.random.normal(ks[8], (L, N, D), jnp.float32)

    prepped = prepare_params(params, d_model=D, n_head=H)   # one-time weight prep
    out = residual_attention_block(x, prepped, d_model=D, n_head=H)
    out = jax.block_until_ready(out)

    ref = _reference(x, params, d_model=D, n_head=H)
    assert out.shape == (L, N, D)
    max_err = float(jnp.max(jnp.abs(out - ref)))
    # bf16 matmul operands (f32 accumulation) + approx softmax reciprocal ->
    # compare against the f32 reference with a correspondingly loosened tolerance.
    assert jnp.allclose(out, ref, atol=2e-2, rtol=2e-2), (
        f"mismatch vs reference, max abs err = {max_err}")

    print("KERNEL_OK")
</pallas_src>

<mosaic_0001>
module attributes {stable_mosaic.version = 11 : i64} {
  func.func @_block_kernel(%arg0: i32, %arg1: memref<2x16x128xf32, #tpu.memory_space<vmem>>, %arg2: memref<1x128xf32, #tpu.memory_space<vmem>>, %arg3: memref<1x128xf32, #tpu.memory_space<vmem>>, %arg4: memref<128x384xbf16, #tpu.memory_space<vmem>>, %arg5: memref<1x384xf32, #tpu.memory_space<vmem>>, %arg6: memref<128x128xbf16, #tpu.memory_space<vmem>>, %arg7: memref<1x128xf32, #tpu.memory_space<vmem>>, %arg8: memref<1x128xf32, #tpu.memory_space<vmem>>, %arg9: memref<1x128xf32, #tpu.memory_space<vmem>>, %arg10: memref<128x512xbf16, #tpu.memory_space<vmem>>, %arg11: memref<1x512xf32, #tpu.memory_space<vmem>>, %arg12: memref<512x128xbf16, #tpu.memory_space<vmem>>, %arg13: memref<1x128xf32, #tpu.memory_space<vmem>>, %arg14: memref<2x16x128xf32, #tpu.memory_space<vmem>>) attributes {dimension_semantics = [#tpu.dimension_semantics<parallel>], iteration_bounds = array<i64: 1>, scalar_prefetch = 0 : i64, scratch_operands = 0 : i64, tpu.core_type = #tpu.core_type<tc>, window_params = [{transform_indices = @transform_0, window_bounds = array<i64: 2, 16, 128>}, {pipeline_mode = #tpu.pipeline_mode<synchronous>, transform_indices = @transform_1, window_bounds = array<i64: 1, 128>}, {pipeline_mode = #tpu.pipeline_mode<synchronous>, transform_indices = @transform_2, window_bounds = array<i64: 1, 128>}, {pipeline_mode = #tpu.pipeline_mode<synchronous>, transform_indices = @transform_3, window_bounds = array<i64: 128, 384>}, {pipeline_mode = #tpu.pipeline_mode<synchronous>, transform_indices = @transform_4, window_bounds = array<i64: 1, 384>}, {pipeline_mode = #tpu.pipeline_mode<synchronous>, transform_indices = @transform_5, window_bounds = array<i64: 128, 128>}, {pipeline_mode = #tpu.pipeline_mode<synchronous>, transform_indices = @transform_6, window_bounds = array<i64: 1, 128>}, {pipeline_mode = #tpu.pipeline_mode<synchronous>, transform_indices = @transform_7, window_bounds = array<i64: 1, 128>}, {pipeline_mode = #tpu.pipeline_mode<synchronous>, transform_indices = @transform_8, window_bounds = array<i64: 1, 128>}, {pipeline_mode = #tpu.pipeline_mode<synchronous>, transform_indices = @transform_9, window_bounds = array<i64: 128, 512>}, {pipeline_mode = #tpu.pipeline_mode<synchronous>, transform_indices = @transform_10, window_bounds = array<i64: 1, 512>}, {pipeline_mode = #tpu.pipeline_mode<synchronous>, transform_indices = @transform_11, window_bounds = array<i64: 512, 128>}, {pipeline_mode = #tpu.pipeline_mode<synchronous>, transform_indices = @transform_12, window_bounds = array<i64: 1, 128>}, {transform_indices = @transform_13, window_bounds = array<i64: 2, 16, 128>}]} {
    %c0 = arith.constant 0 : index
    %c0_0 = arith.constant 0 : index
    %c0_1 = arith.constant 0 : index
    %0 = vector.load %arg1[%c0, %c0_0, %c0_1] : memref<2x16x128xf32, #tpu.memory_space<vmem>>, vector<2x16x128xf32>
    %1 = vector.shape_cast %0 : vector<2x16x128xf32> to vector<32x128xf32>
    %c0_2 = arith.constant 0 : index
    %c0_3 = arith.constant 0 : index
    %2 = vector.load %arg2[%c0_2, %c0_3] : memref<1x128xf32, #tpu.memory_space<vmem>>, vector<1x128xf32>
    %3 = vector.shape_cast %2 : vector<1x128xf32> to vector<128xf32>
    %c0_4 = arith.constant 0 : index
    %c0_5 = arith.constant 0 : index
    %4 = vector.load %arg3[%c0_4, %c0_5] : memref<1x128xf32, #tpu.memory_space<vmem>>, vector<1x128xf32>
    %5 = vector.shape_cast %4 : vector<1x128xf32> to vector<128xf32>
    %cst = arith.constant dense<0.000000e+00> : vector<32xf32>
    %6 = vector.multi_reduction <add>, %1, %cst [1] : vector<32x128xf32> to vector<32xf32>
    %7 = vector.shape_cast %6 : vector<32xf32> to vector<32x1xf32>
    %cst_6 = arith.constant 1.280000e+02 : f32
    %8 = vector.broadcast %cst_6 : f32 to vector<32x1xf32>
    %9 = arith.divf %7, %8 : vector<32x1xf32>
    %10 = vector.broadcast %9 : vector<32x1xf32> to vector<32x128xf32>
    %11 = arith.subf %1, %10 : vector<32x128xf32>
    %12 = arith.mulf %11, %11 : vector<32x128xf32>
    %cst_7 = arith.constant dense<0.000000e+00> : vector<32xf32>
    %13 = vector.multi_reduction <add>, %12, %cst_7 [1] : vector<32x128xf32> to vector<32xf32>
    %14 = vector.shape_cast %13 : vector<32xf32> to vector<32x1xf32>
    %cst_8 = arith.constant 1.280000e+02 : f32
    %15 = vector.broadcast %cst_8 : f32 to vector<32x1xf32>
    %16 = arith.divf %14, %15 : vector<32x1xf32>
    %17 = vector.broadcast %9 : vector<32x1xf32> to vector<32x128xf32>
    %18 = arith.subf %1, %17 : vector<32x128xf32>
    %cst_9 = arith.constant 9.99999974E-6 : f32
    %19 = vector.broadcast %cst_9 : f32 to vector<32x1xf32>
    %20 = arith.addf %16, %19 : vector<32x1xf32>
    %21 = math.rsqrt %20 : vector<32x1xf32>
    %22 = vector.broadcast %21 : vector<32x1xf32> to vector<32x128xf32>
    %23 = arith.mulf %18, %22 : vector<32x128xf32>
    %24 = vector.shape_cast %3 : vector<128xf32> to vector<1x128xf32>
    %25 = vector.broadcast %24 : vector<1x128xf32> to vector<32x128xf32>
    %26 = arith.mulf %23, %25 : vector<32x128xf32>
    %27 = vector.shape_cast %5 : vector<128xf32> to vector<1x128xf32>
    %28 = vector.broadcast %27 : vector<1x128xf32> to vector<32x128xf32>
    %29 = arith.addf %26, %28 : vector<32x128xf32>
    %30 = arith.truncf %29 : vector<32x128xf32> to vector<32x128xbf16>
    %c0_10 = arith.constant 0 : index
    %c0_11 = arith.constant 0 : index
    %31 = vector.load %arg4[%c0_10, %c0_11] : memref<128x384xbf16, #tpu.memory_space<vmem>>, vector<128x384xbf16>
    %cst_12 = arith.constant dense<0.000000e+00> : vector<32x384xf32>
    %32 = tpu.matmul %30, %31, %cst_12 {dimension_numbers = #tpu.dot_dimension_numbers<[1], [0], [0], [1], [0, 0, 1, 1], [], []>} : vector<32x128xbf16>, vector<128x384xbf16>, vector<32x384xf32> -> vector<32x384xf32>
    %c0_13 = arith.constant 0 : index
    %c0_14 = arith.constant 0 : index
    %33 = vector.load %arg5[%c0_13, %c0_14] : memref<1x384xf32, #tpu.memory_space<vmem>>, vector<1x384xf32>
    %34 = vector.shape_cast %33 : vector<1x384xf32> to vector<384xf32>
    %35 = vector.shape_cast %34 : vector<384xf32> to vector<1x384xf32>
    %36 = vector.broadcast %35 : vector<1x384xf32> to vector<32x384xf32>
    %37 = arith.addf %32, %36 : vector<32x384xf32>
    %38 = vector.extract_strided_slice %37 {offsets = [0, 0], sizes = [32, 128], strides = [1, 1]} : vector<32x384xf32> to vector<32x128xf32>
    %39 = arith.truncf %38 : vector<32x128xf32> to vector<32x128xbf16>
    %40 = vector.shape_cast %39 : vector<32x128xbf16> to vector<2x16x128xbf16>
    %41 = vector.extract_strided_slice %37 {offsets = [0, 128], sizes = [32, 128], strides = [1, 1]} : vector<32x384xf32> to vector<32x128xf32>
    %42 = arith.truncf %41 : vector<32x128xf32> to vector<32x128xbf16>
    %43 = vector.shape_cast %42 : vector<32x128xbf16> to vector<2x16x128xbf16>
    %44 = vector.extract_strided_slice %37 {offsets = [0, 256], sizes = [32, 128], strides = [1, 1]} : vector<32x384xf32> to vector<32x128xf32>
    %45 = arith.truncf %44 : vector<32x128xf32> to vector<32x128xbf16>
    %46 = vector.shape_cast %45 : vector<32x128xbf16> to vector<2x16x128xbf16>
    %47 = vector.extract_strided_slice %40 {offsets = [0, 0, 0], sizes = [2, 16, 32], strides = [1, 1, 1]} : vector<2x16x128xbf16> to vector<2x16x32xbf16>
    %48 = vector.extract_strided_slice %43 {offsets = [0, 0, 0], sizes = [2, 16, 32], strides = [1, 1, 1]} : vector<2x16x128xbf16> to vector<2x16x32xbf16>
    %49 = vector.extract_strided_slice %46 {offsets = [0, 0, 0], sizes = [2, 16, 32], strides = [1, 1, 1]} : vector<2x16x128xbf16> to vector<2x16x32xbf16>
    "tpu.trace_start"() <{level = 10 : i32, message = "bld,bmd->blm"}> : () -> ()
    %cst_15 = arith.constant dense<0.000000e+00> : vector<2x16x16xf32>
    %50 = tpu.matmul %47, %48, %cst_15 {dimension_numbers = #tpu.dot_dimension_numbers<[2], [2], [1], [1], [0, 0, 0, 1, 1, 1], [0], [0]>} : vector<2x16x32xbf16>, vector<2x16x32xbf16>, vector<2x16x16xf32> -> vector<2x16x16xf32>
    "tpu.trace_stop"() : () -> ()
    %cst_16 = arith.constant dense<0xFF800000> : vector<2x16xf32>
    %51 = vector.multi_reduction <maximumf>, %50, %cst_16 [2] : vector<2x16x16xf32> to vector<2x16xf32>
    %52 = vector.shape_cast %51 : vector<2x16xf32> to vector<2x16x1xf32>
    %53 = vector.broadcast %52 : vector<2x16x1xf32> to vector<2x16x16xf32>
    %54 = arith.subf %50, %53 : vector<2x16x16xf32>
    %55 = math.exp %54 : vector<2x16x16xf32>
    %cst_17 = arith.constant dense<0.000000e+00> : vector<2x16xf32>
    %56 = vector.multi_reduction <add>, %55, %cst_17 [2] : vector<2x16x16xf32> to vector<2x16xf32>
    %57 = vector.shape_cast %56 : vector<2x16xf32> to vector<2x16x1xf32>
    %58 = tpu.reciprocal %57 {approx = true} : vector<2x16x1xf32> -> vector<2x16x1xf32>
    %59 = vector.broadcast %58 : vector<2x16x1xf32> to vector<2x16x16xf32>
    %60 = arith.mulf %55, %59 : vector<2x16x16xf32>
    %61 = arith.truncf %60 : vector<2x16x16xf32> to vector<2x16x16xbf16>
    "tpu.trace_start"() <{level = 10 : i32, message = "blm,bmd->bld"}> : () -> ()
    %cst_18 = arith.constant dense<0.000000e+00> : vector<2x16x32xf32>
    %62 = tpu.matmul %61, %49, %cst_18 {dimension_numbers = #tpu.dot_dimension_numbers<[2], [1], [1], [2], [0, 0, 0, 1, 1, 2], [0], [0]>} : vector<2x16x16xbf16>, vector<2x16x32xbf16>, vector<2x16x32xf32> -> vector<2x16x32xf32>
    "tpu.trace_stop"() : () -> ()
    %63 = vector.extract_strided_slice %40 {offsets = [0, 0, 32], sizes = [2, 16, 32], strides = [1, 1, 1]} : vector<2x16x128xbf16> to vector<2x16x32xbf16>
    %64 = vector.extract_strided_slice %43 {offsets = [0, 0, 32], sizes = [2, 16, 32], strides = [1, 1, 1]} : vector<2x16x128xbf16> to vector<2x16x32xbf16>
    %65 = vector.extract_strided_slice %46 {offsets = [0, 0, 32], sizes = [2, 16, 32], strides = [1, 1, 1]} : vector<2x16x128xbf16> to vector<2x16x32xbf16>
    "tpu.trace_start"() <{level = 10 : i32, message = "bld,bmd->blm"}> : () -> ()
    %cst_19 = arith.constant dense<0.000000e+00> : vector<2x16x16xf32>
    %66 = tpu.matmul %63, %64, %cst_19 {dimension_numbers = #tpu.dot_dimension_numbers<[2], [2], [1], [1], [0, 0, 0, 1, 1, 1], [0], [0]>} : vector<2x16x32xbf16>, vector<2x16x32xbf16>, vector<2x16x16xf32> -> vector<2x16x16xf32>
    "tpu.trace_stop"() : () -> ()
    %cst_20 = arith.constant dense<0xFF800000> : vector<2x16xf32>
    %67 = vector.multi_reduction <maximumf>, %66, %cst_20 [2] : vector<2x16x16xf32> to vector<2x16xf32>
    %68 = vector.shape_cast %67 : vector<2x16xf32> to vector<2x16x1xf32>
    %69 = vector.broadcast %68 : vector<2x16x1xf32> to vector<2x16x16xf32>
    %70 = arith.subf %66, %69 : vector<2x16x16xf32>
    %71 = math.exp %70 : vector<2x16x16xf32>
    %cst_21 = arith.constant dense<0.000000e+00> : vector<2x16xf32>
    %72 = vector.multi_reduction <add>, %71, %cst_21 [2] : vector<2x16x16xf32> to vector<2x16xf32>
    %73 = vector.shape_cast %72 : vector<2x16xf32> to vector<2x16x1xf32>
    %74 = tpu.reciprocal %73 {approx = true} : vector<2x16x1xf32> -> vector<2x16x1xf32>
    %75 = vector.broadcast %74 : vector<2x16x1xf32> to vector<2x16x16xf32>
    %76 = arith.mulf %71, %75 : vector<2x16x16xf32>
    %77 = arith.truncf %76 : vector<2x16x16xf32> to vector<2x16x16xbf16>
    "tpu.trace_start"() <{level = 10 : i32, message = "blm,bmd->bld"}> : () -> ()
    %cst_22 = arith.constant dense<0.000000e+00> : vector<2x16x32xf32>
    %78 = tpu.matmul %77, %65, %cst_22 {dimension_numbers = #tpu.dot_dimension_numbers<[2], [1], [1], [2], [0, 0, 0, 1, 1, 2], [0], [0]>} : vector<2x16x16xbf16>, vector<2x16x32xbf16>, vector<2x16x32xf32> -> vector<2x16x32xf32>
    "tpu.trace_stop"() : () -> ()
    %79 = vector.extract_strided_slice %40 {offsets = [0, 0, 64], sizes = [2, 16, 32], strides = [1, 1, 1]} : vector<2x16x128xbf16> to vector<2x16x32xbf16>
    %80 = vector.extract_strided_slice %43 {offsets = [0, 0, 64], sizes = [2, 16, 32], strides = [1, 1, 1]} : vector<2x16x128xbf16> to vector<2x16x32xbf16>
    %81 = vector.extract_strided_slice %46 {offsets = [0, 0, 64], sizes = [2, 16, 32], strides = [1, 1, 1]} : vector<2x16x128xbf16> to vector<2x16x32xbf16>
    "tpu.trace_start"() <{level = 10 : i32, message = "bld,bmd->blm"}> : () -> ()
    %cst_23 = arith.constant dense<0.000000e+00> : vector<2x16x16xf32>
    %82 = tpu.matmul %79, %80, %cst_23 {dimension_numbers = #tpu.dot_dimension_numbers<[2], [2], [1], [1], [0, 0, 0, 1, 1, 1], [0], [0]>} : vector<2x16x32xbf16>, vector<2x16x32xbf16>, vector<2x16x16xf32> -> vector<2x16x16xf32>
    "tpu.trace_stop"() : () -> ()
    %cst_24 = arith.constant dense<0xFF800000> : vector<2x16xf32>
    %83 = vector.multi_reduction <maximumf>, %82, %cst_24 [2] : vector<2x16x16xf32> to vector<2x16xf32>
    %84 = vector.shape_cast %83 : vector<2x16xf32> to vector<2x16x1xf32>
    %85 = vector.broadcast %84 : vector<2x16x1xf32> to vector<2x16x16xf32>
    %86 = arith.subf %82, %85 : vector<2x16x16xf32>
    %87 = math.exp %86 : vector<2x16x16xf32>
    %cst_25 = arith.constant dense<0.000000e+00> : vector<2x16xf32>
    %88 = vector.multi_reduction <add>, %87, %cst_25 [2] : vector<2x16x16xf32> to vector<2x16xf32>
    %89 = vector.shape_cast %88 : vector<2x16xf32> to vector<2x16x1xf32>
    %90 = tpu.reciprocal %89 {approx = true} : vector<2x16x1xf32> -> vector<2x16x1xf32>
    %91 = vector.broadcast %90 : vector<2x16x1xf32> to vector<2x16x16xf32>
    %92 = arith.mulf %87, %91 : vector<2x16x16xf32>
    %93 = arith.truncf %92 : vector<2x16x16xf32> to vector<2x16x16xbf16>
    "tpu.trace_start"() <{level = 10 : i32, message = "blm,bmd->bld"}> : () -> ()
    %cst_26 = arith.constant dense<0.000000e+00> : vector<2x16x32xf32>
    %94 = tpu.matmul %93, %81, %cst_26 {dimension_numbers = #tpu.dot_dimension_numbers<[2], [1], [1], [2], [0, 0, 0, 1, 1, 2], [0], [0]>} : vector<2x16x16xbf16>, vector<2x16x32xbf16>, vector<2x16x32xf32> -> vector<2x16x32xf32>
    "tpu.trace_stop"() : () -> ()
    %95 = vector.extract_strided_slice %40 {offsets = [0, 0, 96], sizes = [2, 16, 32], strides = [1, 1, 1]} : vector<2x16x128xbf16> to vector<2x16x32xbf16>
    %96 = vector.extract_strided_slice %43 {offsets = [0, 0, 96], sizes = [2, 16, 32], strides = [1, 1, 1]} : vector<2x16x128xbf16> to vector<2x16x32xbf16>
    %97 = vector.extract_strided_slice %46 {offsets = [0, 0, 96], sizes = [2, 16, 32], strides = [1, 1, 1]} : vector<2x16x128xbf16> to vector<2x16x32xbf16>
    "tpu.trace_start"() <{level = 10 : i32, message = "bld,bmd->blm"}> : () -> ()
    %cst_27 = arith.constant dense<0.000000e+00> : vector<2x16x16xf32>
    %98 = tpu.matmul %95, %96, %cst_27 {dimension_numbers = #tpu.dot_dimension_numbers<[2], [2], [1], [1], [0, 0, 0, 1, 1, 1], [0], [0]>} : vector<2x16x32xbf16>, vector<2x16x32xbf16>, vector<2x16x16xf32> -> vector<2x16x16xf32>
    "tpu.trace_stop"() : () -> ()
    %cst_28 = arith.constant dense<0xFF800000> : vector<2x16xf32>
    %99 = vector.multi_reduction <maximumf>, %98, %cst_28 [2] : vector<2x16x16xf32> to vector<2x16xf32>
    %100 = vector.shape_cast %99 : vector<2x16xf32> to vector<2x16x1xf32>
    %101 = vector.broadcast %100 : vector<2x16x1xf32> to vector<2x16x16xf32>
    %102 = arith.subf %98, %101 : vector<2x16x16xf32>
    %103 = math.exp %102 : vector<2x16x16xf32>
    %cst_29 = arith.constant dense<0.000000e+00> : vector<2x16xf32>
    %104 = vector.multi_reduction <add>, %103, %cst_29 [2] : vector<2x16x16xf32> to vector<2x16xf32>
    %105 = vector.shape_cast %104 : vector<2x16xf32> to vector<2x16x1xf32>
    %106 = tpu.reciprocal %105 {approx = true} : vector<2x16x1xf32> -> vector<2x16x1xf32>
    %107 = vector.broadcast %106 : vector<2x16x1xf32> to vector<2x16x16xf32>
    %108 = arith.mulf %103, %107 : vector<2x16x16xf32>
    %109 = arith.truncf %108 : vector<2x16x16xf32> to vector<2x16x16xbf16>
    "tpu.trace_start"() <{level = 10 : i32, message = "blm,bmd->bld"}> : () -> ()
    %cst_30 = arith.constant dense<0.000000e+00> : vector<2x16x32xf32>
    %110 = tpu.matmul %109, %97, %cst_30 {dimension_numbers = #tpu.dot_dimension_numbers<[2], [1], [1], [2], [0, 0, 0, 1, 1, 2], [0], [0]>} : vector<2x16x16xbf16>, vector<2x16x32xbf16>, vector<2x16x32xf32> -> vector<2x16x32xf32>
    "tpu.trace_stop"() : () -> ()
    %111 = tpu.concatenate %62, %78, %94, %110 in 2 : vector<2x16x32xf32>, vector<2x16x32xf32>, vector<2x16x32xf32>, vector<2x16x32xf32> -> vector<2x16x128xf32>
    %112 = vector.shape_cast %111 : vector<2x16x128xf32> to vector<32x128xf32>
    %113 = arith.truncf %112 : vector<32x128xf32> to vector<32x128xbf16>
    %c0_31 = arith.constant 0 : index
    %c0_32 = arith.constant 0 : index
    %114 = vector.load %arg6[%c0_31, %c0_32] : memref<128x128xbf16, #tpu.memory_space<vmem>>, vector<128x128xbf16>
    %cst_33 = arith.constant dense<0.000000e+00> : vector<32x128xf32>
    %115 = tpu.matmul %113, %114, %cst_33 {dimension_numbers = #tpu.dot_dimension_numbers<[1], [0], [0], [1], [0, 0, 1, 1], [], []>} : vector<32x128xbf16>, vector<128x128xbf16>, vector<32x128xf32> -> vector<32x128xf32>
    %c0_34 = arith.constant 0 : index
    %c0_35 = arith.constant 0 : index
    %116 = vector.load %arg7[%c0_34, %c0_35] : memref<1x128xf32, #tpu.memory_space<vmem>>, vector<1x128xf32>
    %117 = vector.shape_cast %116 : vector<1x128xf32> to vector<128xf32>
    %118 = vector.shape_cast %117 : vector<128xf32> to vector<1x128xf32>
    %119 = vector.broadcast %118 : vector<1x128xf32> to vector<32x128xf32>
    %120 = arith.addf %115, %119 : vector<32x128xf32>
    %121 = arith.addf %1, %120 : vector<32x128xf32>
    %c0_36 = arith.constant 0 : index
    %c0_37 = arith.constant 0 : index
    %122 = vector.load %arg8[%c0_36, %c0_37] : memref<1x128xf32, #tpu.memory_space<vmem>>, vector<1x128xf32>
    %123 = vector.shape_cast %122 : vector<1x128xf32> to vector<128xf32>
    %c0_38 = arith.constant 0 : index
    %c0_39 = arith.constant 0 : index
    %124 = vector.load %arg9[%c0_38, %c0_39] : memref<1x128xf32, #tpu.memory_space<vmem>>, vector<1x128xf32>
    %125 = vector.shape_cast %124 : vector<1x128xf32> to vector<128xf32>
    %cst_40 = arith.constant dense<0.000000e+00> : vector<32xf32>
    %126 = vector.multi_reduction <add>, %121, %cst_40 [1] : vector<32x128xf32> to vector<32xf32>
    %127 = vector.shape_cast %126 : vector<32xf32> to vector<32x1xf32>
    %cst_41 = arith.constant 1.280000e+02 : f32
    %128 = vector.broadcast %cst_41 : f32 to vector<32x1xf32>
    %129 = arith.divf %127, %128 : vector<32x1xf32>
    %130 = vector.broadcast %129 : vector<32x1xf32> to vector<32x128xf32>
    %131 = arith.subf %121, %130 : vector<32x128xf32>
    %132 = arith.mulf %131, %131 : vector<32x128xf32>
    %cst_42 = arith.constant dense<0.000000e+00> : vector<32xf32>
    %133 = vector.multi_reduction <add>, %132, %cst_42 [1] : vector<32x128xf32> to vector<32xf32>
    %134 = vector.shape_cast %133 : vector<32xf32> to vector<32x1xf32>
    %cst_43 = arith.constant 1.280000e+02 : f32
    %135 = vector.broadcast %cst_43 : f32 to vector<32x1xf32>
    %136 = arith.divf %134, %135 : vector<32x1xf32>
    %137 = vector.broadcast %129 : vector<32x1xf32> to vector<32x128xf32>
    %138 = arith.subf %121, %137 : vector<32x128xf32>
    %cst_44 = arith.constant 9.99999974E-6 : f32
    %139 = vector.broadcast %cst_44 : f32 to vector<32x1xf32>
    %140 = arith.addf %136, %139 : vector<32x1xf32>
    %141 = math.rsqrt %140 : vector<32x1xf32>
    %142 = vector.broadcast %141 : vector<32x1xf32> to vector<32x128xf32>
    %143 = arith.mulf %138, %142 : vector<32x128xf32>
    %144 = vector.shape_cast %123 : vector<128xf32> to vector<1x128xf32>
    %145 = vector.broadcast %144 : vector<1x128xf32> to vector<32x128xf32>
    %146 = arith.mulf %143, %145 : vector<32x128xf32>
    %147 = vector.shape_cast %125 : vector<128xf32> to vector<1x128xf32>
    %148 = vector.broadcast %147 : vector<1x128xf32> to vector<32x128xf32>
    %149 = arith.addf %146, %148 : vector<32x128xf32>
    %150 = arith.truncf %149 : vector<32x128xf32> to vector<32x128xbf16>
    %c0_45 = arith.constant 0 : index
    %c0_46 = arith.constant 0 : index
    %151 = vector.load %arg10[%c0_45, %c0_46] : memref<128x512xbf16, #tpu.memory_space<vmem>>, vector<128x512xbf16>
    %cst_47 = arith.constant dense<0.000000e+00> : vector<32x512xf32>
    %152 = tpu.matmul %150, %151, %cst_47 {dimension_numbers = #tpu.dot_dimension_numbers<[1], [0], [0], [1], [0, 0, 1, 1], [], []>} : vector<32x128xbf16>, vector<128x512xbf16>, vector<32x512xf32> -> vector<32x512xf32>
    %c0_48 = arith.constant 0 : index
    %c0_49 = arith.constant 0 : index
    %153 = vector.load %arg11[%c0_48, %c0_49] : memref<1x512xf32, #tpu.memory_space<vmem>>, vector<1x512xf32>
    %154 = vector.shape_cast %153 : vector<1x512xf32> to vector<512xf32>
    %155 = vector.shape_cast %154 : vector<512xf32> to vector<1x512xf32>
    %156 = vector.broadcast %155 : vector<1x512xf32> to vector<32x512xf32>
    %157 = arith.addf %152, %156 : vector<32x512xf32>
    %cst_50 = arith.constant 1.702000e+00 : f32
    %158 = vector.broadcast %cst_50 : f32 to vector<32x512xf32>
    %159 = arith.mulf %158, %157 : vector<32x512xf32>
    %160 = arith.negf %159 : vector<32x512xf32>
    %161 = math.exp %160 : vector<32x512xf32>
    %cst_51 = arith.constant 1.000000e+00 : f32
    %162 = vector.broadcast %cst_51 : f32 to vector<32x512xf32>
    %163 = arith.addf %162, %161 : vector<32x512xf32>
    %164 = arith.divf %162, %163 : vector<32x512xf32>
    %165 = arith.mulf %157, %164 : vector<32x512xf32>
    %166 = arith.truncf %165 : vector<32x512xf32> to vector<32x512xbf16>
    %c0_52 = arith.constant 0 : index
    %c0_53 = arith.constant 0 : index
    %167 = vector.load %arg12[%c0_52, %c0_53] : memref<512x128xbf16, #tpu.memory_space<vmem>>, vector<512x128xbf16>
    %cst_54 = arith.constant dense<0.000000e+00> : vector<32x128xf32>
    %168 = tpu.matmul %166, %167, %cst_54 {dimension_numbers = #tpu.dot_dimension_numbers<[1], [0], [0], [1], [0, 0, 1, 1], [], []>} : vector<32x512xbf16>, vector<512x128xbf16>, vector<32x128xf32> -> vector<32x128xf32>
    %c0_55 = arith.constant 0 : index
    %c0_56 = arith.constant 0 : index
    %169 = vector.load %arg13[%c0_55, %c0_56] : memref<1x128xf32, #tpu.memory_space<vmem>>, vector<1x128xf32>
    %170 = vector.shape_cast %169 : vector<1x128xf32> to vector<128xf32>
    %171 = vector.shape_cast %170 : vector<128xf32> to vector<1x128xf32>
    %172 = vector.broadcast %171 : vector<1x128xf32> to vector<32x128xf32>
    %173 = arith.addf %168, %172 : vector<32x128xf32>
    %174 = arith.addf %121, %173 : vector<32x128xf32>
    %175 = vector.shape_cast %174 : vector<32x128xf32> to vector<2x16x128xf32>
    %c0_57 = arith.constant 0 : index
    %c0_58 = arith.constant 0 : index
    %c0_59 = arith.constant 0 : index
    %176 = vector.load %arg14[%c0_57, %c0_58, %c0_59] : memref<2x16x128xf32, #tpu.memory_space<vmem>>, vector<2x16x128xf32>
    tpu.vector_store %arg14[%c0_57, %c0_58, %c0_59], %175 {strides = array<i32>} : memref<2x16x128xf32, #tpu.memory_space<vmem>>, vector<2x16x128xf32>,
    return
  }
  func.func @transform_0(%arg0: i32) -> (i32, i32, i32) {
    %c0_i32 = arith.constant 0 : i32
    %c0_i32_0 = arith.constant 0 : i32
    %c0_i32_1 = arith.constant 0 : i32
    return %arg0, %c0_i32, %c0_i32_0 : i32, i32, i32
  }
  func.func @transform_1(%arg0: i32) -> (i32, i32) {
    %c0_i32 = arith.constant 0 : i32
    %c0_i32_0 = arith.constant 0 : i32
    %c0_i32_1 = arith.constant 0 : i32
    return %c0_i32, %c0_i32_0 : i32, i32
  }
  func.func @transform_2(%arg0: i32) -> (i32, i32) {
    %c0_i32 = arith.constant 0 : i32
    %c0_i32_0 = arith.constant 0 : i32
    %c0_i32_1 = arith.constant 0 : i32
    return %c0_i32, %c0_i32_0 : i32, i32
  }
  func.func @transform_3(%arg0: i32) -> (i32, i32) {
    %c0_i32 = arith.constant 0 : i32
    %c0_i32_0 = arith.constant 0 : i32
    %c0_i32_1 = arith.constant 0 : i32
    return %c0_i32, %c0_i32_0 : i32, i32
  }
  func.func @transform_4(%arg0: i32) -> (i32, i32) {
    %c0_i32 = arith.constant 0 : i32
    %c0_i32_0 = arith.constant 0 : i32
    %c0_i32_1 = arith.constant 0 : i32
    return %c0_i32, %c0_i32_0 : i32, i32
  }
  func.func @transform_5(%arg0: i32) -> (i32, i32) {
    %c0_i32 = arith.constant 0 : i32
    %c0_i32_0 = arith.constant 0 : i32
    %c0_i32_1 = arith.constant 0 : i32
    return %c0_i32, %c0_i32_0 : i32, i32
  }
  func.func @transform_6(%arg0: i32) -> (i32, i32) {
    %c0_i32 = arith.constant 0 : i32
    %c0_i32_0 = arith.constant 0 : i32
    %c0_i32_1 = arith.constant 0 : i32
    return %c0_i32, %c0_i32_0 : i32, i32
  }
  func.func @transform_7(%arg0: i32) -> (i32, i32) {
    %c0_i32 = arith.constant 0 : i32
    %c0_i32_0 = arith.constant 0 : i32
    %c0_i32_1 = arith.constant 0 : i32
    return %c0_i32, %c0_i32_0 : i32, i32
  }
  func.func @transform_8(%arg0: i32) -> (i32, i32) {
    %c0_i32 = arith.constant 0 : i32
    %c0_i32_0 = arith.constant 0 : i32
    %c0_i32_1 = arith.constant 0 : i32
    return %c0_i32, %c0_i32_0 : i32, i32
  }
  func.func @transform_9(%arg0: i32) -> (i32, i32) {
    %c0_i32 = arith.constant 0 : i32
    %c0_i32_0 = arith.constant 0 : i32
    %c0_i32_1 = arith.constant 0 : i32
    return %c0_i32, %c0_i32_0 : i32, i32
  }
  func.func @transform_10(%arg0: i32) -> (i32, i32) {
    %c0_i32 = arith.constant 0 : i32
    %c0_i32_0 = arith.constant 0 : i32
    %c0_i32_1 = arith.constant 0 : i32
    return %c0_i32, %c0_i32_0 : i32, i32
  }
  func.func @transform_11(%arg0: i32) -> (i32, i32) {
    %c0_i32 = arith.constant 0 : i32
    %c0_i32_0 = arith.constant 0 : i32
    %c0_i32_1 = arith.constant 0 : i32
    return %c0_i32, %c0_i32_0 : i32, i32
  }
  func.func @transform_12(%arg0: i32) -> (i32, i32) {
    %c0_i32 = arith.constant 0 : i32
    %c0_i32_0 = arith.constant 0 : i32
    %c0_i32_1 = arith.constant 0 : i32
    return %c0_i32, %c0_i32_0 : i32, i32
  }
  func.func @transform_13(%arg0: i32) -> (i32, i32, i32) {
    %c0_i32 = arith.constant 0 : i32
    %c0_i32_0 = arith.constant 0 : i32
    %c0_i32_1 = arith.constant 0 : i32
    return %arg0, %c0_i32, %c0_i32_0 : i32, i32, i32
  }
}

</mosaic_0001>

<bundles_post_ra>
// kernel: tpu_custom_call.1
= control target key start
LH: loop header
LB: loop body
LE: loop exit
PB: predicated region body
PF: predicated region fallthrough
CT: control target
= control target key end

     0   :  { %18 = vsyncpa [#allocation3], 0  ;;  %s4244_s0 = inlined_call_operand.hbm [shape: f32[2,16,128], index: 0, kind: input, shape index: {}]   ;;  %s4245_s1 = inlined_call_operand.hbm [shape: f32[1,128], index: 1, kind: input, shape index: {}]   ;;  %s4246_s2 = inlined_call_operand.hbm [shape: f32[1,128], index: 2, kind: input, shape index: {}]   ;;  %s4247_s3 = inlined_call_operand.hbm [shape: bf16[128,384], index: 3, kind: input, shape index: {}]   ;;  %s4248_s4 = inlined_call_operand.vmem [shape: f32[1,384], index: 4, kind: input, shape index: {}]   ;;  %s4249_s5 = inlined_call_operand.hbm [shape: bf16[128,128], index: 5, kind: input, shape index: {}]   ;;  %s4250_s6 = inlined_call_operand.hbm [shape: f32[1,128], index: 6, kind: input, shape index: {}]   ;;  %s4251_s7 = inlined_call_operand.hbm [shape: f32[1,128], index: 7, kind: input, shape index: {}]   ;;  %s4252_s8 = inlined_call_operand.hbm [shape: f32[1,128], index: 8, kind: input, shape index: {}]   ;;  %s4253_s9 = inlined_call_operand.hbm [shape: bf16[128,512], index: 9, kind: input, shape index: {}]   ;;  %s4254_s10 = inlined_call_operand.vmem [shape: f32[1,512], index: 10, kind: input, shape index: {}]   ;;  %s4255_s11 = inlined_call_operand.hbm [shape: bf16[512,128], index: 11, kind: input, shape index: {}]   ;;  %s4256_s12 = inlined_call_operand.vmem [shape: f32[1,128], index: 12, kind: input, shape index: {}]   ;;  %s4257_s13 = inlined_call_operand.hbm [shape: f32[2,16,128], index: 13, kind: output, shape index: {}]  }
   0x1   :  { %19 = vsyncpa [#allocation6], 0 }
   0x2   :  { %20 = vsyncpa [#allocation9], 0 }
   0x3   :  { %21 = vsyncpa [#allocation12], 0 }
   0x4   :  { %22 = vsyncpa [#allocation15], 0 }
   0x5   :  { %23 = vsyncpa [#allocation18], 0  ;;  %s43_s27 = sshll.u32 %s4245_s1, 4  ;;  %s44_s27 = int_to_ptr.hbm [resolvable:$true] %s43_s27 }
   0x6   :  { %24 = vsyncpa [#allocation4], 0  ;;  %s3383_s28 = smov [#allocation5]   ;;  %s64_s15 = sshll.u32 %s4247_s3, 4  ;;  %s65_s15 = int_to_ptr.hbm [resolvable:$true] %s64_s15 }
   0x7   :  { %s45_s29 = sshll.u32 %s3383_s28, 4  ;;  %s3384_s16 = smov [#allocation8]   ;;  %s46_s29 = int_to_ptr.vmem [resolvable:$true] %s45_s29 }
   0x8   :  { %48 = dma.hbm_to_vmem [thread:$0]  %s44_s27, 16, %s46_s29, [#allocation6]  }
   0x9   :  { %s66_s17 = sshll.u32 %s3384_s16, 4  ;;  %s3385_s18 = smov 192   ;;  %s67_s17 = int_to_ptr.vmem [resolvable:$true] %s66_s17 }
   0xa   :  { %s3386_s19 = smov 12   ;;  %s93_s1 = sshll.u32 %s4250_s6, 4  ;;  %s94_s1 = int_to_ptr.hbm [resolvable:$true] %s93_s1 }
   0xb   :  { %72 = dma.hbm_to_vmem [thread:$0]  %s65_s15, 3072, %s67_s17, [#allocation9], %s3385_s18, %s3385_s18, %s3386_s19  }
   0xc   :  { %s3387_s22 = smov [#allocation11]   ;;  %s115_s3 = sshll.u32 %s4252_s8, 4  ;;  %s116_s3 = int_to_ptr.hbm [resolvable:$true] %s115_s3 }
   0xd   :  { %s95_s23 = sshll.u32 %s3387_s22, 4  ;;  %s3388_s26 = smov [#allocation14]   ;;  %s96_s23 = int_to_ptr.vmem [resolvable:$true] %s95_s23 }
   0xe   :  { %98 = dma.hbm_to_vmem [thread:$0]  %s94_s1, 16, %s96_s23, [#allocation12]  }
   0xf   :  { %s117_s27 = sshll.u32 %s3388_s26, 4  ;;  %s29_s30 = sshll.u32 %s4244_s0, 4  ;;  %s118_s27 = int_to_ptr.vmem [resolvable:$true] %s117_s27  ;;  %s30_s30 = int_to_ptr.hbm [resolvable:$true] %s29_s30 }
  0x10   :  { %120 = dma.hbm_to_vmem [thread:$0]  %s116_s3, 16, %s118_s27, [#allocation15]  }
  0x11   :  { %s3389_s6 = smov [#allocation2]   ;;  %s54_s17 = sshll.u32 %s4246_s2, 4  ;;  %s55_s17 = int_to_ptr.hbm [resolvable:$true] %s54_s17 }
  0x12   :  { %s31_s14 = sshll.u32 %s3389_s6, 4  ;;  %s3390_s18 = smov 128   ;;  %s32_s14 = int_to_ptr.vmem [resolvable:$true] %s31_s14 }
  0x13   :  { %s3391_s8 = smov 8   ;;  %s3392_s19 = smov [#allocation7]  }
  0x14   :  { %37 = dma.hbm_to_vmem [thread:$0]  %s30_s30, 512, %s32_s14, [#allocation3], %s3390_s18, %s3390_s18, %s3391_s8  }
  0x15   :  { %s56_s20 = sshll.u32 %s3392_s19, 4  ;;  %s79_s1 = sshll.u32 %s4249_s5, 4  ;;  %s57_s20 = int_to_ptr.vmem [resolvable:$true] %s56_s20  ;;  %s80_s1 = int_to_ptr.hbm [resolvable:$true] %s79_s1 }
  0x16   :  { %59 = dma.hbm_to_vmem [thread:$0]  %s55_s17, 16, %s57_s20, [#allocation6]  }
  0x17   :  { %s3393_s22 = smov [#allocation10]   ;;  %s104_s25 = sshll.u32 %s4251_s7, 4  ;;  %s105_s25 = int_to_ptr.hbm [resolvable:$true] %s104_s25 }
  0x18   :  { %s81_s23 = sshll.u32 %s3393_s22, 4  ;;  %s3394_s3 = smov 64   ;;  %s82_s23 = int_to_ptr.vmem [resolvable:$true] %s81_s23 }
  0x19   :  { %s3395_s26 = smov 4   ;;  %s3396_s27 = smov [#allocation13]  }
  0x1a   :  { %87 = dma.hbm_to_vmem [thread:$0]  %s80_s1, 1024, %s82_s23, [#allocation9], %s3394_s3, %s3394_s3, %s3395_s26  }
  0x1b   :  { %s106_s28 = sshll.u32 %s3396_s27, 4  ;;  %s125_s30 = sshll.u32 %s4253_s9, 4  ;;  %s107_s28 = int_to_ptr.vmem [resolvable:$true] %s106_s28  ;;  %s126_s30 = int_to_ptr.hbm [resolvable:$true] %s125_s30 }
  0x1c   :  { %109 = dma.hbm_to_vmem [thread:$0]  %s105_s25, 16, %s107_s28, [#allocation12]  }
  0x1d   :  { %s3397_s6 = smov [#allocation16]   ;;  %s140_s16 = sshll.u32 %s4255_s11, 4  ;;  %s141_s16 = int_to_ptr.hbm [resolvable:$true] %s140_s16 }
  0x1e   :  { %s127_s14 = sshll.u32 %s3397_s6, 4  ;;  %s3398_s17 = smov 256   ;;  %s128_s14 = int_to_ptr.vmem [resolvable:$true] %s127_s14 }
  0x1f   :  { %s3399_s19 = smov 16   ;;  %s3400_s20 = smov [#allocation17]  }
  0x20   :  { %133 = dma.hbm_to_vmem [thread:$0]  %s126_s30, 4096, %s128_s14, [#allocation15], %s3398_s17, %s3398_s17, %s3399_s19  }
  0x21   :  { %s142_s0 = sshll.u32 %s3400_s20, 4  ;;  %s143_s0 = int_to_ptr.vmem [resolvable:$true] %s142_s0 }
  0x22   :  { %148 = dma.hbm_to_vmem [thread:$0]  %s141_s16, 4096, %s143_s0, [#allocation18], %s3394_s3, %s3394_s3, %s3395_s26  }
  0x23   :  { %3369 = dma.done.wait [#allocation3], 512  }
  0x24   :  { %3370 = vsyncadd [#allocation3], 4294966784 }
  0x25   :  { %3371 = dma.done.wait [#allocation6], 32  }
  0x26   :  { %3372 = vsyncadd [#allocation6], 4294967264 }
  0x27   :  { %3373 = dma.done.wait [#allocation9], 4096  }
  0x28   :  { %3374 = vsyncadd [#allocation9], 4294963200 }
  0x29   :  { %3375 = dma.done.wait [#allocation12], 32  }
  0x2a   :  { %3376 = vsyncadd [#allocation12], 4294967264 }
  0x2b   :  { %3377 = dma.done.wait [#allocation15], 4112  }
  0x2c   :  { %3378 = vsyncadd [#allocation15], 4294963184 }
  0x2d   :  { %3379 = dma.done.wait [#allocation18], 4096  }
  0x2e   :  { %3380 = vsyncadd [#allocation18], 4294963200  ;;  %v194_v0 = vld [vmem:[#allocation2 + $0x10] sm:$0xff]  ;;  %v192_v1 = vld [vmem:[#allocation2] sm:$0xff]  ;;  %v3401_v4 = vmov 128.0   ;;  %vm548_vm13 = vcmask 261120  }
  0x2f   :  { %202 = vadd.xlane.f32.xlu1 %v194_v0  ;;  %198 = vadd.xlane.f32.xlu0 %v192_v1  ;;  %v195_v2 = vld [vmem:[#allocation2 + $0x18] sm:$0xff]  ;;  %v193_v3 = vld [vmem:[#allocation2 + $0x8] sm:$0xff]  ;;  %2955 = vrcp.f32 %v3401_v4  ;;  %v2822_v29 = vld [vmem:[#allocation8 + $0xac] sm:$0xf]  ;;  %s3403_s21 = smov 32   ;;  %vm599_vm14 = vcmask 130048  }
  0x30   :  { %v2471_v27 = vld [vmem:[#allocation8 + $0xa8] sm:$0xf]  ;;  %v2823_v28 = vld [vmem:[#allocation8 + $0xb0] sm:$0xf0]  ;;  %v2473_v31 = vld [vmem:[#allocation8 + $0xb4] sm:$0xf0] }
  0x31   :  { %v2472_v30 = vor.u32 %v2823_v28, %v2471_v27  ;;  %v2479_v32 = vld [vmem:[#allocation8 + $0xb0] sm:$0xf]  ;;  %v2824_v33 = vld [vmem:[#allocation8 + $0xb8] sm:$0xf0]  ;;  %v2476_v34 = vor.u32 %v2822_v29, %v2473_v31  ;;  %v2819_v38 = vld [vmem:[#allocation8 + $0x94] sm:$0xf] }
  0x32   :  { %v2480_v35 = vor.u32 %v2824_v33, %v2479_v32  ;;  %v2459_v36 = vld [vmem:[#allocation8 + $0x90] sm:$0xf]  ;;  %v2820_v37 = vld [vmem:[#allocation8 + $0x98] sm:$0xf0]  ;;  %v2461_v40 = vld [vmem:[#allocation8 + $0x9c] sm:$0xf0] }
  0x33   :  { %469 = vmatpush.bf16.msra.mxu0 %v2472_v30  ;;  %488 = vmatpush.bf16.msra.mxu1 %v2476_v34  ;;  %v2460_v39 = vor.u32 %v2820_v37, %v2459_v36  ;;  %v2467_v41 = vld [vmem:[#allocation8 + $0x98] sm:$0xf]  ;;  %v2821_v42 = vld [vmem:[#allocation8 + $0xa0] sm:$0xf0]  ;;  %v2464_v43 = vor.u32 %v2819_v38, %v2461_v40  ;;  %v2816_v47 = vld [vmem:[#allocation8 + $0x7c] sm:$0xf] }
  0x34   :  { %507 = vmatpush.bf16.msra.mxu2 %v2480_v35  ;;  %v2468_v44 = vor.u32 %v2821_v42, %v2467_v41  ;;  %v2447_v45 = vld [vmem:[#allocation8 + $0x78] sm:$0xf]  ;;  %v2817_v46 = vld [vmem:[#allocation8 + $0x80] sm:$0xf0]  ;;  %v2449_v49 = vld [vmem:[#allocation8 + $0x84] sm:$0xf0] }
  0x35   :  { %v2956_v5 = vpop.eup %2955  ;;  %v2448_v48 = vor.u32 %v2817_v46, %v2447_v45  ;;  %v2455_v50 = vld [vmem:[#allocation8 + $0x80] sm:$0xf]  ;;  %v2818_v51 = vld [vmem:[#allocation8 + $0x88] sm:$0xf0]  ;;  %v2452_v52 = vor.u32 %v2816_v47, %v2449_v49  ;;  %v2813_v56 = vld [vmem:[#allocation8 + $0x64] sm:$0xf] }
  0x36   :  { %v207_v6 = vmul.f32 128.0, %v2956_v5  ;;  %vm211_vm0 = vweird.f32 %v2956_v5  ;;  %v2456_v53 = vor.u32 %v2818_v51, %v2455_v50  ;;  %v2435_v54 = vld [vmem:[#allocation8 + $0x60] sm:$0xf]  ;;  %v2814_v55 = vld [vmem:[#allocation8 + $0x68] sm:$0xf0]  ;;  %vm1194_vm15 = vcmask 523264  }
  0x37   :  { %204 = vadd.xlane.f32.xlu1 %v195_v2  ;;  %200 = vadd.xlane.f32.xlu0 %v193_v3  ;;  %v2436_v57 = vor.u32 %v2814_v55, %v2435_v54  ;;  %v2437_v58 = vld [vmem:[#allocation8 + $0x6c] sm:$0xf0]  ;;  %v2443_v59 = vld [vmem:[#allocation8 + $0x68] sm:$0xf]  ;;  %v2815_v60 = vld [vmem:[#allocation8 + $0x70] sm:$0xf0] }
  0x38   :  { %v208_v7 = vsub.f32 1.0, %v207_v6  ;;  %470 = vmatpush.bf16.msra.mxu0 %v2460_v39  ;;  %489 = vmatpush.bf16.msra.mxu1 %v2464_v43  ;;  %v2440_v61 = vor.u32 %v2813_v56, %v2437_v58  ;;  %v2444_v62 = vor.u32 %v2815_v60, %v2443_v59  ;;  %v2423_v63 = vld [vmem:[#allocation8 + $0x48] sm:$0xf]  ;;  %v2431_v4 = vld [vmem:[#allocation8 + $0x50] sm:$0xf] }
  0x39   :  { %508 = vmatpush.bf16.msra.mxu2 %v2468_v44  ;;  %v2407_v27 = vld [vmem:[#allocation8 + $0x20] sm:$0xf]  ;;  %v2806_v28 = vld [vmem:[#allocation8 + $0x28] sm:$0xf0]  ;;  %v2801_v34 = vld [vmem:[#allocation8 + $0x4] sm:$0xf] }
  0x3a   :  { %v209_v8 = vmul.f32 %v2956_v5, %v208_v7  ;;  %v2408_v31 = vor.u32 %v2806_v28, %v2407_v27  ;;  %v2387_v32 = vld [vmem:[#allocation8] sm:$0xf]  ;;  %v2802_v33 = vld [vmem:[#allocation8 + $0x8] sm:$0xf0]  ;;  %v2389_v38 = vld [vmem:[#allocation8 + $0xc] sm:$0xf0] }
  0x3b   :  { %v2388_v37 = vor.u32 %v2802_v33, %v2387_v32  ;;  %v2395_v39 = vld [vmem:[#allocation8 + $0x8] sm:$0xf]  ;;  %v2803_v40 = vld [vmem:[#allocation8 + $0x10] sm:$0xf0]  ;;  %v2392_v41 = vor.u32 %v2801_v34, %v2389_v38 }
  0x3c   :  { %v210_v9 = vadd.f32 %v2956_v5, %v209_v8  ;;  %471 = vmatpush.bf16.msra.mxu0 %v2448_v48  ;;  %490 = vmatpush.bf16.msra.mxu1 %v2452_v52  ;;  %v2411_v8 = vld [vmem:[#allocation8 + $0x30] sm:$0xf]  ;;  %v2396_v42 = vor.u32 %v2803_v40, %v2395_v39 }
  0x3d   :  { %509 = vmatpush.bf16.msra.mxu2 %v2456_v53 }
  0x3e   :  { %v3512_v10 = vsel %vm211_vm0, %v2956_v5, %v210_v9  ;;  %v2812_v5 = vld [vmem:[#allocation8 + $0x58] sm:$0xf0]  ;;  %vm1199_vm0 = vcmask 785408  }
  0x3f   :  { %v2432_v7 = vor.u32 %v2812_v5, %v2431_v4  ;;  %v2808_v9 = vld [vmem:[#allocation8 + $0x38] sm:$0xf0] }
  0x40   :  { %472 = vmatpush.bf16.msra.mxu0 %v2436_v57  ;;  %491 = vmatpush.bf16.msra.mxu1 %v2440_v61 }
  0x41   :  { %510 = vmatpush.bf16.msra.mxu2 %v2444_v62 }
  0x45   :  { %511 = vmatpush.bf16.msra.mxu2 %v2432_v7 }
  0xa2   :  { %v203_v11 = vpop.xlane.xlu1 %202  ;;  %v199_v12 = vpop.xlane.xlu0 %198 }
  0xa3   :  { %v215_v13 = vmul.f32 %v3512_v10, %v203_v11  ;;  %v213_v14 = vmul.f32 %v3512_v10, %v199_v12  ;;  %v2807_v11 = vld [vmem:[#allocation8 + $0x34] sm:$0xf]  ;;  %v2412_v12 = vor.u32 %v2808_v9, %v2411_v8  ;;  %v2949_v8 = vld [vmem:[#allocation5] ss:$0 sm:$0xff] }
  0xa5   :  { %v3516_v15 = vsub.f32 %v194_v0, %v215_v13  ;;  %v3518_v16 = vsub.f32 %v192_v1, %v213_v14  ;;  %v2811_v0 = vld [vmem:[#allocation8 + $0x50] sm:$0xf0]  ;;  %v2810_v1 = vld [vmem:[#allocation8 + $0x4c] sm:$0xf]  ;;  %v2413_v13 = vld [vmem:[#allocation8 + $0x3c] sm:$0xf0] }
  0xa6   :  { %v2419_v14 = vld [vmem:[#allocation8 + $0x38] sm:$0xf] }
  0xa7   :  { %v223_v17 = vmul.f32 %v3516_v15, %v3516_v15  ;;  %v221_v18 = vmul.f32 %v3518_v16, %v3518_v16 }
  0xa9   :  { %229 = vadd.xlane.f32.xlu0 %v223_v17  ;;  %225 = vadd.xlane.f32.xlu2 %v221_v18  ;;  %v2809_v17 = vld [vmem:[#allocation8 + $0x40] sm:$0xf0]  ;;  %v2416_v18 = vor.u32 %v2807_v11, %v2413_v13 }
  0xaa   :  { %v205_v19 = vpop.xlane.xlu1 %204  ;;  %v201_v20 = vpop.xlane.xlu0 %200 }
  0xab   :  { %v216_v21 = vmul.f32 %v3512_v10, %v205_v19  ;;  %v214_v22 = vmul.f32 %v3512_v10, %v201_v20  ;;  %v2420_v19 = vor.u32 %v2809_v17, %v2419_v14  ;;  %v2399_v20 = vld [vmem:[#allocation8 + $0x18] sm:$0xf] }
  0xad   :  { %v3526_v23 = vsub.f32 %v195_v2, %v216_v21  ;;  %v3528_v24 = vsub.f32 %v193_v3, %v214_v22  ;;  %v2424_v2 = vor.u32 %v2811_v0, %v2423_v63  ;;  %v2425_v3 = vld [vmem:[#allocation8 + $0x54] sm:$0xf0]  ;;  %512 = vmatpush.bf16.msra.mxu2 %v2420_v19  ;;  %v2805_v21 = vld [vmem:[#allocation8 + $0x20] sm:$0xf0]  ;;  %v2804_v22 = vld [vmem:[#allocation8 + $0x1c] sm:$0xf] }
  0xae   :  { %v2428_v6 = vor.u32 %v2810_v1, %v2425_v3 }
  0xaf   :  { %v224_v25 = vmul.f32 %v3526_v23, %v3526_v23  ;;  %v222_v26 = vmul.f32 %v3528_v24, %v3528_v24  ;;  %473 = vmatpush.bf16.msra.mxu0 %v2424_v2 }
  0xb0   :  { %492 = vmatpush.bf16.msra.mxu1 %v2428_v6 }
  0xb1   :  { %231 = vadd.xlane.f32.xlu1 %v224_v25  ;;  %227 = vadd.xlane.f32.xlu2 %v222_v26  ;;  %v2400_v25 = vor.u32 %v2805_v21, %v2399_v20  ;;  %v2401_v26 = vld [vmem:[#allocation8 + $0x24] sm:$0xf0] }
  0xb2   :  { %v2404_v30 = vor.u32 %v2804_v22, %v2401_v26  ;;  %513 = vmatpush.bf16.msra.mxu2 %v2408_v31 }
  0xb3   :  { %474 = vmatpush.bf16.msra.mxu0 %v2412_v12 }
  0xb4   :  { %493 = vmatpush.bf16.msra.mxu1 %v2416_v18  ;;  %v2950_v18 = vld [vmem:[#allocation7] ss:$0 sm:$0xff] }
  0xb6   :  { %514 = vmatpush.bf16.msra.mxu2 %v2396_v42 }
  0xb7   :  { %475 = vmatpush.bf16.msra.mxu0 %v2400_v25 }
  0xb8   :  { %494 = vmatpush.bf16.msra.mxu1 %v2404_v30 }
  0xbb   :  { %476 = vmatpush.bf16.msra.mxu0 %v2388_v37 }
  0xbc   :  { %495 = vmatpush.bf16.msra.mxu1 %v2392_v41 }
 0x11c   :  { %v226_v29 = vpop.xlane.xlu2 %225  ;;  %v230_v36 = vpop.xlane.xlu0 %229 }
 0x11d   :  { %v233_v35 = vmul.f32 %v226_v29, %v3512_v10  ;;  %v235_v44 = vmul.f32 %v230_v36, %v3512_v10 }
 0x11f   :  { %v237_v43 = vadd.f32 1e-05, %v233_v35  ;;  %v239_v45 = vadd.f32 1e-05, %v235_v44  ;;  %v333_v35 = vld [vmem:[%s4248_s4] sm:$0x7] }
 0x120   :  { %v335_v38 = vperm.slane %v333_v35, 0  ;;  %v336_v39 = vperm.slane %v333_v35, 1  ;;  %s3402_s4 = smov 96  }
 0x121   :  { %2957 = vrsqrt.f32 %v237_v43  ;;  %vm247_vm2 = vweird.f32 %v237_v43  ;;  %vm267_vm9 = vweird.f32 %v239_v45 }
 0x122   :  { %2959 = vrsqrt.f32 %v239_v45 }
 0x124   :  { %v232_v46 = vpop.xlane.xlu1 %231  ;;  %v228_v47 = vpop.xlane.xlu2 %227 }
 0x125   :  { %v236_v48 = vmul.f32 %v232_v46, %v3512_v10  ;;  %v234_v49 = vmul.f32 %v228_v47, %v3512_v10 }
 0x127   :  { %v2958_v50 = vpop.eup %2957  ;;  %v240_v51 = vadd.f32 1e-05, %v236_v48  ;;  %v238_v52 = vadd.f32 1e-05, %v234_v49 }
 0x128   :  { %v242_v53 = vmul.f32 %v2958_v50, %v237_v43  ;;  %v2960_v56 = vpop.eup %2959  ;;  %vm248_vm1 = vweird.f32 %v2958_v50 }
 0x129   :  { %2961 = vrsqrt.f32 %v240_v51  ;;  %v262_v62 = vmul.f32 %v2960_v56, %v239_v45  ;;  %vm249_vm3 = vmor %vm247_vm2, %vm248_vm1  ;;  %vm257_vm5 = vweird.f32 %v238_v52  ;;  %vm277_vm7 = vweird.f32 %v240_v51 }
 0x12a   :  { %v243_v54 = vmul.f32 %v2958_v50, %v242_v53  ;;  %2963 = vrsqrt.f32 %v238_v52  ;;  %vm268_vm10 = vweird.f32 %v2960_v56 }
 0x12b   :  { %v263_v3 = vmul.f32 %v2960_v56, %v262_v62  ;;  %vm269_vm12 = vmor %vm267_vm9, %vm268_vm10 }
 0x12c   :  { %v244_v55 = vmul.f32 0.5, %v243_v54 }
 0x12d   :  { %v264_v9 = vmul.f32 0.5, %v263_v3 }
 0x12e   :  { %v245_v57 = vsub.f32 1.5, %v244_v55 }
 0x12f   :  { %v2962_v58 = vpop.eup %2961  ;;  %v265_v19 = vsub.f32 1.5, %v264_v9 }
 0x130   :  { %v2964_v59 = vpop.eup %2963  ;;  %v272_v60 = vmul.f32 %v2962_v58, %v240_v51  ;;  %v246_v61 = vmul.f32 %v2958_v50, %v245_v57  ;;  %vm278_vm8 = vweird.f32 %v2962_v58 }
 0x131   :  { %v252_v63 = vmul.f32 %v2964_v59, %v238_v52  ;;  %vm258_vm4 = vweird.f32 %v2964_v59  ;;  %vm279_vm11 = vmor %vm277_vm7, %vm278_vm8  ;;  %v266_v25 = vmul.f32 %v2960_v56, %v265_v19 }
 0x132   :  { %v273_v0 = vmul.f32 %v2962_v58, %v272_v60  ;;  %v250_v2 = vsel %vm249_vm3, %v2958_v50, %v246_v61  ;;  %vm259_vm6 = vmor %vm257_vm5, %vm258_vm4 }
 0x133   :  { %v253_v1 = vmul.f32 %v2964_v59, %v252_v63  ;;  %v281_v7 = vmul.f32 %v250_v2, %v3518_v16  ;;  %v270_v28 = vsel %vm269_vm12, %v2960_v56, %v266_v25 }
 0x134   :  { %v274_v5 = vmul.f32 0.5, %v273_v0  ;;  %v283_v29 = vmul.f32 %v270_v28, %v3516_v15 }
 0x135   :  { %v254_v4 = vmul.f32 0.5, %v253_v1  ;;  %v288_v17 = vmul.f32 %v2949_v8, %v281_v7 }
 0x136   :  { %v275_v12 = vsub.f32 1.5, %v274_v5  ;;  %v290_v31 = vmul.f32 %v2949_v8, %v283_v29 }
 0x137   :  { %v255_v6 = vsub.f32 1.5, %v254_v4  ;;  %v295_v16 = vadd.f32 %v2950_v18, %v288_v17 }
 0x138   :  { %v276_v21 = vmul.f32 %v2962_v58, %v275_v12  ;;  %v297_v33 = vadd.f32 %v2950_v18, %v290_v31 }
 0x139   :  { %v256_v11 = vmul.f32 %v2964_v59, %v255_v6 }
 0x13a   :  { %v280_v27 = vsel %vm279_vm11, %v2962_v58, %v276_v21 }
 0x13b   :  { %v260_v13 = vsel %vm259_vm6, %v2964_v59, %v256_v11  ;;  %v337_v59 = vperm.slane %v333_v35, 2 }
 0x13c   :  { %v282_v14 = vmul.f32 %v260_v13, %v3528_v24  ;;  %v284_v24 = vmul.f32 %v280_v27, %v3526_v23 }
 0x13e   :  { %v289_v20 = vmul.f32 %v2949_v8, %v282_v14  ;;  %v291_v30 = vmul.f32 %v2949_v8, %v284_v24 }
 0x140   :  { %v296_v22 = vadd.f32 %v2950_v18, %v289_v20  ;;  %v298_v32 = vadd.f32 %v2950_v18, %v291_v30 }
 0x142   :  { %v299_v26 = vpack.c.bf16 %v296_v22, %v295_v16  ;;  %v300_v34 = vpack.c.bf16 %v298_v32, %v297_v33 }
 0x144   :  { %477 = vmatmul.bf16.vlgmr.msra.gmra.mxu0 %v299_v26  ;;  %496 = vmatmul.bf16.vlgmr.msra.gmra.mxu1 %v299_v26 }
 0x145   :  { %515 = vmatmul.bf16.vlgmr.msra.gmra.mxu2 %v299_v26 }
 0x154   :  { %482 = vmatmul.bf16.gmra.mxu0 %v300_v34  ;;  %501 = vmatmul.bf16.gmra.mxu1 %v300_v34 }
 0x155   :  { %520 = vmatmul.bf16.gmra.mxu2 %v300_v34 }
 0x1c1   :  { %v478_v36 = vpop.f32.mrf.mxu0  ;;  %v497_v37 = vpop.f32.mrf.mxu1 }
 0x1c2   :  { %v479_v40 = vadd.f32 %v478_v36, %v335_v38  ;;  %v498_v23 = vadd.f32 %v497_v37, %v336_v39 }
 0x1c4   :  { %v526_v43 = vpack.c.bf16 %v479_v40, %v479_v40  ;;  %v530_v44 = vpack.c.bf16 %v498_v23, %v498_v23 }
 0x1c6   :  { %v540_v49 = vunpack.c.l.b16 %v526_v43  ;;  %v545_v50 = vunpack.c.l.b16 %v530_v44 }
 0x1c8   :  { %v516_v41 = vpop.f32.mrf.mxu2 }
 0x1c9   :  { %v480_v15 = vpop.f32.mrf.mxu0  ;;  %v499_v42 = vpop.f32.mrf.mxu1  ;;  %v517_v63 = vadd.f32 %v516_v41, %v337_v59 }
 0x1ca   :  { %v481_v45 = vadd.f32 %v480_v15, %v335_v38  ;;  %v500_v46 = vadd.f32 %v499_v42, %v336_v39 }
 0x1cb   :  { %v534_v8 = vpack.c.bf16 %v517_v63, %v517_v63 }
 0x1cc   :  { %v527_v47 = vpack.c.bf16 %v481_v45, %v481_v45  ;;  %v531_v48 = vpack.c.bf16 %v500_v46, %v500_v46 }
 0x1cd   :  { %v655_v19 = vunpack.c.l.b16 %v534_v8 }
 0x1ce   :  { %v541_v51 = vunpack.c.l.b16 %v527_v47  ;;  %v546_v52 = vunpack.c.l.b16 %v531_v48 }
 0x1d0   :  { %v542_v53 = vpack.c.b16 %v541_v51, %v540_v49  ;;  %v547_v54 = vpack.c.b16 %v546_v52, %v545_v50  ;;  %v518_v55 = vpop.f32.mrf.mxu2 }
 0x1d1   :  { %v483_v56 = vpop.f32.mrf.mxu0  ;;  %v502_v57 = vpop.f32.mrf.mxu1  ;;  %v519_v60 = vadd.f32 %v518_v55, %v337_v59 }
 0x1d2   :  { %706 = vrot.lane.b32.xlu2 %v547_v54, %s3402_s4  ;;  %704 = vrot.lane.b32.xlu0 %v542_v53, %s3402_s4  ;;  %v553_v58 = vsel %vm548_vm13, %v547_v54, 0  ;;  %v484_v61 = vadd.f32 %v483_v56, %v335_v38  ;;  %v503_v62 = vadd.f32 %v502_v57, %v336_v39 }
 0x1d3   :  { %562 = vmatpush.bf16.xpose.msra.mxu3 %v553_v58  ;;  %v535_v1 = vpack.c.bf16 %v519_v60, %v519_v60 }
 0x1d4   :  { %v528_v2 = vpack.c.bf16 %v484_v61, %v484_v61  ;;  %v532_v5 = vpack.c.bf16 %v503_v62, %v503_v62 }
 0x1d5   :  { %v656_v12 = vunpack.c.l.b16 %v535_v1 }
 0x1d6   :  { %v571_v13 = vunpack.c.l.b16 %v528_v2  ;;  %v576_v14 = vunpack.c.l.b16 %v532_v5 }
 0x1d7   :  { %v3550_v26 = vpack.c.b16 %v656_v12, %v655_v19 }
 0x1d8   :  { %v521_v0 = vpop.f32.mrf.mxu2 }
 0x1d9   :  { %v485_v3 = vpop.f32.mrf.mxu0  ;;  %v504_v4 = vpop.f32.mrf.mxu1  ;;  %v522_v20 = vadd.f32 %v521_v0, %v337_v59 }
 0x1da   :  { %v486_v6 = vadd.f32 %v485_v3, %v335_v38  ;;  %v505_v7 = vadd.f32 %v504_v4, %v336_v39  ;;  %852 = vrot.lane.b32.xlu2 %v547_v54, %s3394_s3  ;;  %2481 = vmatmul.msk.bf16.vlgmr.msra.gmra.mxu3 %vm548_vm13, %v542_v53 }
 0x1db   :  { %v536_v24 = vpack.c.bf16 %v522_v20, %v522_v20 }
 0x1dc   :  { %v529_v9 = vpack.c.bf16 %v486_v6, %v486_v6  ;;  %v533_v11 = vpack.c.bf16 %v505_v7, %v505_v7 }
 0x1dd   :  { %v683_v30 = vunpack.c.l.b16 %v536_v24 }
 0x1de   :  { %v572_v17 = vunpack.c.l.b16 %v529_v9  ;;  %v577_v18 = vunpack.c.l.b16 %v533_v11 }
 0x1e0   :  { %v573_v21 = vpack.c.b16 %v572_v17, %v571_v13  ;;  %v578_v16 = vpack.c.b16 %v577_v18, %v576_v14  ;;  %v523_v22 = vpop.f32.mrf.mxu2 }
 0x1e1   :  { %v524_v25 = vadd.f32 %v523_v22, %v337_v59 }
 0x1e2   :  { %850 = vrot.lane.b32.xlu2 %v542_v53, %s3394_s3  ;;  %730 = vrot.lane.b32.xlu1 %v578_v16, %s3402_s4  ;;  %v583_v27 = vsel %vm548_vm13, %v578_v16, 0 }
 0x1e3   :  { %v537_v28 = vpack.c.bf16 %v524_v25, %v524_v25  ;;  %728 = vrot.lane.b32.xlu0 %v573_v21, %s3402_s4  ;;  %592 = vmatpush.bf16.xpose.msrb.mxu3 %v583_v27 }
 0x1e5   :  { %v684_v29 = vunpack.c.l.b16 %v537_v28 }
 0x1e7   :  { %v3557_v31 = vpack.c.b16 %v684_v29, %v683_v30 }
 0x1ea   :  { %876 = vrot.lane.b32.xlu1 %v578_v16, %s3394_s3  ;;  %874 = vrot.lane.b32.xlu2 %v573_v21, %s3394_s3 }
 0x1eb   :  { %669 = vmatpush.bf16.msra.mxu3 %v3550_v26  ;;  %998 = vrot.lane.b32.xlu0 %v547_v54, %s3403_s21 }
 0x1ec   :  { %2482 = vmatmul.msk.bf16.vlgmr.msrb.gmra.mxu3 %vm548_vm13, %v573_v21 }
 0x1ef   :  { %697 = vmatpush.bf16.msrb.mxu3 %v3557_v31 }
 0x1f2   :  { %996 = vrot.lane.b32.xlu1 %v542_v53, %s3403_s21  ;;  %1020 = vrot.lane.b32.xlu2 %v573_v21, %s3403_s21 }
 0x1f3   :  { %1022 = vrot.lane.b32.xlu0 %v578_v16, %s3403_s21 }
 0x1fa   :  { %830 = vrot.lane.b32.xlu2 %v3557_v31, %s3402_s4 }
 0x1fb   :  { %805 = vrot.lane.b32.xlu0 %v3550_v26, %s3402_s4 }
 0x22c   :  { %v707_v32 = vpop.permute.xlu2 %706 }
 0x22d   :  { %v712_v33 = vsel %vm548_vm13, %v707_v32, 0 }
 0x22e   :  { %721 = vmatpush.bf16.xpose.msrb.mxu1 %v712_v33 }
 0x234   :  { %v853_v34 = vpop.permute.xlu2 %852 }
 0x235   :  { %v858_v35 = vsel %vm548_vm13, %v853_v34, 0 }
 0x236   :  { %867 = vmatpush.bf16.xpose.msrb.mxu0 %v858_v35 }
 0x23c   :  { %v851_v36 = vpop.permute.xlu2 %850 }
 0x23d   :  { %2489 = vmatmul.msk.bf16.vlgmr.msrb.gmra.mxu0 %vm548_vm13, %v851_v36 }
 0x244   :  { %v705_v37 = vpop.permute.xlu0 %704  ;;  %v875_v50 = vpop.permute.xlu2 %874 }
 0x245   :  { %2485 = vmatmul.msk.bf16.vlgmr.msrb.gmra.mxu1 %vm548_vm13, %v705_v37 }
 0x24c   :  { %v1021_v56 = vpop.permute.xlu2 %1020 }
 0x254   :  { %v731_v38 = vpop.permute.xlu1 %730  ;;  %v3605_v6 = vpop.permute.xlu2 %830 }
 0x255   :  { %v736_v39 = vsel %vm548_vm13, %v731_v38, 0  ;;  %v729_v40 = vpop.permute.xlu0 %728 }
 0x256   :  { %745 = vmatpush.bf16.xpose.msra.mxu1 %v736_v39 }
 0x25c   :  { %v877_v23 = vpop.permute.xlu1 %876 }
 0x25d   :  { %v882_v41 = vsel %vm548_vm13, %v877_v23, 0  ;;  %v999_v15 = vpop.permute.xlu0 %998  ;;  %v564_v42 = vpop.f32.mrf.mxu3  ;;  %2486 = vmatmul.msk.bf16.vlgmr.msra.gmra.mxu1 %vm548_vm13, %v729_v40 }
 0x25e   :  { %v1004_v43 = vsel %vm548_vm13, %v999_v15, 0  ;;  %891 = vmatpush.bf16.xpose.msrb.mxu1 %v882_v41  ;;  %v600_v44 = vsel %vm599_vm14, %v564_v42, -inf }
 0x25f   :  { %1013 = vmatpush.bf16.xpose.msra.mxu0 %v1004_v43  ;;  %601 = vmax.xlane.f32.xlu1 %v600_v44 }
 0x264   :  { %v997_v45 = vpop.permute.xlu1 %996 }
 0x265   :  { %v1023_v46 = vpop.permute.xlu0 %1022  ;;  %v566_v47 = vpop.f32.mrf.mxu3 }
 0x266   :  { %v1028_v48 = vsel %vm548_vm13, %v1023_v46, 0  ;;  %2493 = vmatmul.msk.bf16.vlgmr.msra.gmra.mxu0 %vm548_vm13, %v997_v45  ;;  %v603_v49 = vsel %vm599_vm14, %v566_v47, -inf }
 0x267   :  { %1037 = vmatpush.bf16.xpose.msra.mxu1 %v1028_v48  ;;  %604 = vmax.xlane.f32.xlu0 %v603_v49 }
 0x26d   :  { %v806_v51 = vpop.permute.xlu0 %805  ;;  %2490 = vmatmul.msk.bf16.vlgmr.msrb.gmra.mxu1 %vm548_vm13, %v875_v50 }
 0x26e   :  { %818 = vmatpush.bf16.msrb.mxu2 %v806_v51 }
 0x26f   :  { %v594_v52 = vpop.f32.mrf.mxu3 }
 0x270   :  { %v606_v53 = vsel %vm599_vm14, %v594_v52, -inf }
 0x271   :  { %607 = vmax.xlane.f32.xlu2 %v606_v53 }
 0x277   :  { %v596_v54 = vpop.f32.mrf.mxu3 }
 0x278   :  { %v609_v55 = vsel %vm599_vm14, %v596_v54, -inf }
 0x279   :  { %610 = vmax.xlane.f32.xlu1 %v609_v55 }
 0x27d   :  { %2494 = vmatmul.msk.bf16.vlgmr.msra.gmra.mxu1 %vm548_vm13, %v1021_v56 }
 0x2ba   :  { %v3587_v57 = vpop.f32.mrf.mxu0 }
 0x2bb   :  { %v898_v58 = vsel %vm599_vm14, %v3587_v57, -inf }
 0x2bc   :  { %899 = vmax.xlane.f32.xlu2 %v898_v58 }
 0x2c2   :  { %v3591_v59 = vpop.f32.mrf.mxu1  ;;  %v3593_v60 = vpop.f32.mrf.mxu0 }
 0x2c3   :  { %v901_v61 = vsel %vm599_vm14, %v3593_v60, -inf  ;;  %v752_v62 = vsel %vm599_vm14, %v3591_v59, -inf }
 0x2c4   :  { %902 = vmax.xlane.f32.xlu1 %v901_v61  ;;  %753 = vmax.xlane.f32.xlu0 %v752_v62 }
 0x2ca   :  { %v3599_v63 = vpop.f32.mrf.mxu1 }
 0x2cb   :  { %v755_v0 = vsel %vm599_vm14, %v3599_v63, -inf }
 0x2cc   :  { %756 = vmax.xlane.f32.xlu2 %v755_v0 }
 0x2d2   :  { %v602_v1 = vpop.xlane.xlu1 %601 }
 0x2d3   :  { %v612_v2 = vsub.f32 %v564_v42, %v602_v1 }
 0x2d5   :  { %v616_v3 = vmul.f32 1.442695, %v612_v2 }
 0x2d7   :  { %2965 = vpow2.f32 %v616_v3 }
 0x2da   :  { %v3603_v4 = vpop.f32.mrf.mxu1  ;;  %v605_v5 = vpop.xlane.xlu0 %604 }
 0x2db   :  { %v613_v7 = vsub.f32 %v566_v47, %v605_v5  ;;  %v758_v8 = vsel %vm599_vm14, %v3603_v4, -inf }
 0x2dc   :  { %759 = vmax.xlane.f32.xlu1 %v758_v8 }
 0x2dd   :  { %v3609_v9 = vpop.eup %2965  ;;  %v618_v12 = vmul.f32 1.442695, %v613_v7 }
 0x2de   :  { %v624_v11 = vsel %vm599_vm14, %v3609_v9, 0.0 }
 0x2df   :  { %625 = vadd.xlane.f32.xlu2 %v624_v11  ;;  %2967 = vpow2.f32 %v618_v12 }
 0x2e2   :  { %v3613_v13 = vpop.f32.mrf.mxu1 }
 0x2e3   :  { %v3615_v17 = vpop.f32.mrf.mxu0  ;;  %v761_v18 = vsel %vm599_vm14, %v3613_v13, -inf }
 0x2e4   :  { %v608_v14 = vpop.xlane.xlu2 %607  ;;  %762 = vmax.xlane.f32.xlu0 %v761_v18  ;;  %v1044_v20 = vsel %vm599_vm14, %v3615_v17, -inf }
 0x2e5   :  { %v614_v19 = vsub.f32 %v594_v52, %v608_v14  ;;  %1045 = vmax.xlane.f32.xlu1 %v1044_v20  ;;  %v3621_v16 = vpop.eup %2967 }
 0x2e6   :  { %v627_v29 = vsel %vm599_vm14, %v3621_v16, 0.0 }
 0x2e7   :  { %v620_v21 = vmul.f32 1.442695, %v614_v19 }
 0x2e9   :  { %2969 = vpow2.f32 %v620_v21 }
 0x2ea   :  { %v3623_v22 = vpop.f32.mrf.mxu1 }
 0x2eb   :  { %v3625_v27 = vpop.f32.mrf.mxu0  ;;  %v904_v35 = vsel %vm599_vm14, %v3623_v22, -inf }
 0x2ec   :  { %v611_v25 = vpop.xlane.xlu1 %610  ;;  %v1047_v24 = vsel %vm599_vm14, %v3625_v27, -inf }
 0x2ed   :  { %v615_v28 = vsub.f32 %v596_v54, %v611_v25  ;;  %1048 = vmax.xlane.f32.xlu0 %v1047_v24  ;;  %628 = vadd.xlane.f32.xlu1 %v627_v29 }
 0x2ef   :  { %v622_v30 = vmul.f32 1.442695, %v615_v28  ;;  %v3631_v32 = vpop.eup %2969 }
 0x2f0   :  { %v630_v36 = vsel %vm599_vm14, %v3631_v32, 0.0 }
 0x2f1   :  { %2971 = vpow2.f32 %v622_v30 }
 0x2f2   :  { %v3633_v33 = vpop.f32.mrf.mxu1 }
 0x2f3   :  { %v907_v34 = vsel %vm599_vm14, %v3633_v33, -inf }
 0x2f4   :  { %908 = vmax.xlane.f32.xlu2 %v907_v34 }
 0x2f5   :  { %905 = vmax.xlane.f32.xlu0 %v904_v35  ;;  %631 = vadd.xlane.f32.xlu1 %v630_v36 }
 0x2f7   :  { %v3641_v37 = vpop.eup %2971 }
 0x2f8   :  { %v633_v39 = vsel %vm599_vm14, %v3641_v37, 0.0 }
 0x2fa   :  { %v3643_v38 = vpop.f32.mrf.mxu1 }
 0x2fb   :  { %v1050_v41 = vsel %vm599_vm14, %v3643_v38, -inf }
 0x2fd   :  { %634 = vadd.xlane.f32.xlu0 %v633_v39 }
 0x302   :  { %v3647_v40 = vpop.f32.mrf.mxu1 }
 0x303   :  { %v1053_v23 = vsel %vm599_vm14, %v3647_v40, -inf }
 0x304   :  { %1054 = vmax.xlane.f32.xlu2 %v1053_v23 }
 0x305   :  { %1051 = vmax.xlane.f32.xlu0 %v1050_v41 }
 0x319   :  { %951 = vrot.lane.b32.xlu0 %v3550_v26, %s3394_s3 }
 0x32f   :  { %v900_v15 = vpop.xlane.xlu2 %899 }
 0x330   :  { %v910_v45 = vsub.f32 %v3587_v57, %v900_v15 }
 0x332   :  { %v914_v46 = vmul.f32 1.442695, %v910_v45 }
 0x337   :  { %v754_v42 = vpop.xlane.xlu0 %753  ;;  %v903_v47 = vpop.xlane.xlu1 %902 }
 0x338   :  { %v764_v43 = vsub.f32 %v3591_v59, %v754_v42  ;;  %v911_v50 = vsub.f32 %v3593_v60, %v903_v47 }
 0x33a   :  { %v768_v44 = vmul.f32 1.442695, %v764_v43  ;;  %v916_v54 = vmul.f32 1.442695, %v911_v50 }
 0x33c   :  { %2973 = vpow2.f32 %v768_v44 }
 0x33d   :  { %2975 = vpow2.f32 %v914_v46 }
 0x33f   :  { %v757_v48 = vpop.xlane.xlu2 %756 }
 0x340   :  { %v765_v49 = vsub.f32 %v3599_v63, %v757_v48 }
 0x342   :  { %v770_v51 = vmul.f32 1.442695, %v765_v49  ;;  %v3659_v52 = vpop.eup %2973 }
 0x343   :  { %v776_v53 = vsel %vm599_vm14, %v3659_v52, 0.0  ;;  %v3663_v55 = vpop.eup %2975 }
 0x344   :  { %2977 = vpow2.f32 %v770_v51  ;;  %777 = vadd.xlane.f32.xlu2 %v776_v53  ;;  %v922_v58 = vsel %vm599_vm14, %v3663_v55, 0.0 }
 0x345   :  { %2979 = vpow2.f32 %v916_v54 }
 0x34a   :  { %v3665_v56 = vpop.eup %2977 }
 0x34b   :  { %v779_v57 = vsel %vm599_vm14, %v3665_v56, 0.0  ;;  %v3671_v60 = vpop.eup %2979 }
 0x34c   :  { %780 = vadd.xlane.f32.xlu1 %v779_v57  ;;  %923 = vadd.xlane.f32.xlu2 %v922_v58  ;;  %v925_v63 = vsel %vm599_vm14, %v3671_v60, 0.0 }
 0x34f   :  { %v760_v59 = vpop.xlane.xlu1 %759 }
 0x350   :  { %v766_v61 = vsub.f32 %v3603_v4, %v760_v59 }
 0x352   :  { %v772_v62 = vmul.f32 1.442695, %v766_v61  ;;  %v626_v1 = vpop.xlane.xlu2 %625 }
 0x354   :  { %2981 = vpow2.f32 %v772_v62  ;;  %926 = vadd.xlane.f32.xlu1 %v925_v63 }
 0x355   :  { %2983 = vrcp.f32 %v626_v1 }
 0x357   :  { %v763_v0 = vpop.xlane.xlu0 %762 }
 0x358   :  { %v1046_v2 = vpop.xlane.xlu1 %1045  ;;  %v767_v3 = vsub.f32 %v3613_v13, %v763_v0 }
 0x359   :  { %v1056_v36 = vsub.f32 %v3615_v17, %v1046_v2 }
 0x35a   :  { %v3677_v5 = vpop.eup %2981  ;;  %v774_v7 = vmul.f32 1.442695, %v767_v3 }
 0x35b   :  { %v782_v8 = vsel %vm599_vm14, %v3677_v5, 0.0  ;;  %v2984_v12 = vpop.eup %2983  ;;  %v1060_v15 = vmul.f32 1.442695, %v1056_v36 }
 0x35c   :  { %2985 = vpow2.f32 %v774_v7  ;;  %783 = vadd.xlane.f32.xlu2 %v782_v8  ;;  %v640_v13 = vmul.f32 %v2984_v12, %v3609_v9 }
 0x35e   :  { %v644_v21 = vpack.c.bf16 %v640_v13, %v640_v13 }
 0x360   :  { %v629_v4 = vpop.xlane.xlu1 %628  ;;  %v1049_v11 = vpop.xlane.xlu0 %1048  ;;  %v650_v23 = vunpack.c.l.b16 %v644_v21 }
 0x361   :  { %2987 = vrcp.f32 %v629_v4  ;;  %v1057_v17 = vsub.f32 %v3625_v27, %v1049_v11 }
 0x362   :  { %v3681_v14 = vpop.eup %2985 }
 0x363   :  { %v785_v18 = vsel %vm599_vm14, %v3681_v14, 0.0  ;;  %v1062_v46 = vmul.f32 1.442695, %v1057_v17 }
 0x364   :  { %786 = vadd.xlane.f32.xlu1 %v785_v18 }
 0x367   :  { %v2988_v19 = vpop.eup %2987  ;;  %v909_v20 = vpop.xlane.xlu2 %908 }
 0x368   :  { %v641_v25 = vmul.f32 %v2988_v19, %v3621_v16  ;;  %v913_v28 = vsub.f32 %v3633_v33, %v909_v20  ;;  %v632_v24 = vpop.xlane.xlu1 %631  ;;  %v906_v29 = vpop.xlane.xlu0 %905 }
 0x369   :  { %v912_v30 = vsub.f32 %v3623_v22, %v906_v29  ;;  %2989 = vrcp.f32 %v632_v24 }
 0x36a   :  { %v645_v34 = vpack.c.bf16 %v641_v25, %v641_v25  ;;  %v920_v35 = vmul.f32 1.442695, %v913_v28 }
 0x36b   :  { %v918_v39 = vmul.f32 1.442695, %v912_v30 }
 0x36c   :  { %v651_v9 = vunpack.c.l.b16 %v645_v34  ;;  %2991 = vpow2.f32 %v920_v35 }
 0x36d   :  { %2993 = vpow2.f32 %v918_v39 }
 0x36e   :  { %v652_v41 = vpack.c.b16 %v651_v9, %v650_v23 }
 0x36f   :  { %v2990_v33 = vpop.eup %2989 }
 0x370   :  { %2483 = vmatmul.msk.bf16.vlgmr.msra.gmra.mxu3 %vm599_vm14, %v652_v41  ;;  %v635_v16 = vpop.xlane.xlu0 %634  ;;  %v642_v44 = vmul.f32 %v2990_v33, %v3631_v32 }
 0x371   :  { %843 = vmatpush.bf16.msra.mxu3 %v3605_v6  ;;  %2995 = vrcp.f32 %v635_v16 }
 0x372   :  { %v3692_v22 = vpop.eup %2991  ;;  %2997 = vpow2.f32 %v1060_v15  ;;  %v646_v48 = vpack.c.bf16 %v642_v44, %v642_v44 }
 0x373   :  { %v3694_v42 = vpop.eup %2993  ;;  %v931_v43 = vsel %vm599_vm14, %v3692_v22, 0.0  ;;  %2999 = vpow2.f32 %v1062_v46 }
 0x374   :  { %932 = vadd.xlane.f32.xlu0 %v931_v43  ;;  %976 = vrot.lane.b32.xlu2 %v3557_v31, %s3394_s3  ;;  %v928_v6 = vsel %vm599_vm14, %v3694_v42, 0.0  ;;  %v678_v53 = vunpack.c.l.b16 %v646_v48 }
 0x375   :  { %929 = vadd.xlane.f32.xlu1 %v928_v6 }
 0x377   :  { %v2996_v45 = vpop.eup %2995  ;;  %v1055_v47 = vpop.xlane.xlu2 %1054 }
 0x378   :  { %v643_v49 = vmul.f32 %v2996_v45, %v3641_v37  ;;  %v1059_v27 = vsub.f32 %v3647_v40, %v1055_v47  ;;  %v3706_v50 = vpop.eup %2997  ;;  %v1052_v40 = vpop.xlane.xlu0 %1051 }
 0x379   :  { %v1068_v57 = vsel %vm599_vm14, %v3706_v50, 0.0  ;;  %v3711_v59 = vpop.eup %2999  ;;  %v1058_v63 = vsub.f32 %v3643_v38, %v1052_v40 }
 0x37a   :  { %v647_v51 = vpack.c.bf16 %v643_v49, %v643_v49  ;;  %v1066_v32 = vmul.f32 1.442695, %v1059_v27  ;;  %v1071_v62 = vsel %vm599_vm14, %v3711_v59, 0.0 }
 0x37b   :  { %v1064_v1 = vmul.f32 1.442695, %v1058_v63 }
 0x37c   :  { %v679_v54 = vunpack.c.l.b16 %v647_v51  ;;  %3001 = vpow2.f32 %v1066_v32 }
 0x37d   :  { %1069 = vadd.xlane.f32.xlu1 %v1068_v57  ;;  %3003 = vpow2.f32 %v1064_v1 }
 0x37e   :  { %v680_v58 = vpack.c.b16 %v679_v54, %v678_v53 }
 0x380   :  { %2484 = vmatmul.msk.bf16.vlgmr.msrb.gmra.mxu3 %vm599_vm14, %v680_v58 }
 0x382   :  { %v3713_v37 = vpop.eup %3001 }
 0x383   :  { %v1077_v61 = vsel %vm599_vm14, %v3713_v37, 0.0  ;;  %v3720_v2 = vpop.eup %3003 }
 0x384   :  { %1078 = vadd.xlane.f32.xlu0 %v1077_v61  ;;  %v1074_v3 = vsel %vm599_vm14, %v3720_v2, 0.0 }
 0x385   :  { %1072 = vadd.xlane.f32.xlu1 %v1071_v62 }
 0x38b   :  { %v952_v0 = vpop.permute.xlu0 %951 }
 0x38c   :  { %964 = vmatpush.bf16.msra.mxu2 %v952_v0 }
 0x39d   :  { %1075 = vadd.xlane.f32.xlu2 %v1074_v3 }
 0x39e   :  { %1097 = vrot.lane.b32.xlu1 %v3550_v26, %s3403_s21 }
 0x3a6   :  { %1122 = vrot.lane.b32.xlu1 %v3557_v31, %s3403_s21 }
 0x3b7   :  { %v778_v7 = vpop.xlane.xlu2 %777 }
 0x3b8   :  { %3005 = vrcp.f32 %v778_v7 }
 0x3be   :  { %v3006_v38 = vpop.eup %3005 }
 0x3bf   :  { %v781_v8 = vpop.xlane.xlu1 %780  ;;  %v792_v4 = vmul.f32 %v3006_v38, %v3659_v52  ;;  %v924_v13 = vpop.xlane.xlu2 %923 }
 0x3c0   :  { %3007 = vrcp.f32 %v781_v8 }
 0x3c1   :  { %v796_v12 = vpack.c.bf16 %v792_v4, %v792_v4 }
 0x3c3   :  { %v802_v26 = vunpack.c.l.b16 %v796_v12 }
 0x3c6   :  { %v3008_v11 = vpop.eup %3007 }
 0x3c7   :  { %v793_v18 = vmul.f32 %v3008_v11, %v3665_v56  ;;  %v927_v19 = vpop.xlane.xlu1 %926 }
 0x3c8   :  { %3009 = vrcp.f32 %v927_v19 }
 0x3c9   :  { %v797_v20 = vpack.c.bf16 %v793_v18, %v793_v18  ;;  %3011 = vrcp.f32 %v924_v13 }
 0x3cb   :  { %v803_v21 = vunpack.c.l.b16 %v797_v20 }
 0x3cd   :  { %v804_v25 = vpack.c.b16 %v803_v21, %v802_v26 }
 0x3ce   :  { %v3010_v31 = vpop.eup %3009 }
 0x3cf   :  { %2487 = vmatmul.msk.bf16.vlgmr.msrb.gmra.mxu2 %vm599_vm14, %v804_v25  ;;  %v784_v28 = vpop.xlane.xlu2 %783  ;;  %v3012_v24 = vpop.eup %3011  ;;  %v939_v29 = vmul.f32 %v3010_v31, %v3671_v60 }
 0x3d0   :  { %3013 = vrcp.f32 %v784_v28  ;;  %v938_v52 = vmul.f32 %v3012_v24, %v3663_v55 }
 0x3d1   :  { %v943_v30 = vpack.c.bf16 %v939_v29, %v939_v29 }
 0x3d2   :  { %v942_v56 = vpack.c.bf16 %v938_v52, %v938_v52 }
 0x3d3   :  { %v949_v39 = vunpack.c.l.b16 %v943_v30 }
 0x3d4   :  { %v948_v23 = vunpack.c.l.b16 %v942_v56 }
 0x3d6   :  { %v3014_v36 = vpop.eup %3013  ;;  %v950_v41 = vpack.c.b16 %v949_v39, %v948_v23 }
 0x3d7   :  { %v977_v34 = vpop.permute.xlu2 %976  ;;  %v787_v35 = vpop.xlane.xlu1 %786  ;;  %v794_v9 = vmul.f32 %v3014_v36, %v3677_v5 }
 0x3d8   :  { %3015 = vrcp.f32 %v787_v35  ;;  %989 = vmatpush.bf16.msrb.mxu3 %v977_v34 }
 0x3d9   :  { %v798_v16 = vpack.c.bf16 %v794_v9, %v794_v9 }
 0x3db   :  { %v827_v55 = vunpack.c.l.b16 %v798_v16  ;;  %v2832_v16 = vld [vmem:[#allocation10 + $0x38] sm:$0xff] }
 0x3dc   :  { %1274 = vmatpush.bf16.msrb.mxu0 %v2832_v16 }
 0x3de   :  { %v3016_v15 = vpop.eup %3015 }
 0x3df   :  { %v795_v33 = vmul.f32 %v3016_v15, %v3681_v14  ;;  %2491 = vmatmul.msk.bf16.vlgmr.msra.gmra.mxu2 %vm599_vm14, %v950_v41 }
 0x3e1   :  { %v799_v60 = vpack.c.bf16 %v795_v33, %v795_v33  ;;  %v2831_v33 = vld [vmem:[#allocation10 + $0x30] sm:$0xff] }
 0x3e2   :  { %1275 = vmatpush.bf16.msrb.mxu0 %v2831_v33 }
 0x3e3   :  { %v828_v17 = vunpack.c.l.b16 %v799_v60  ;;  %v2830_v60 = vld [vmem:[#allocation10 + $0x28] sm:$0xff] }
 0x3e5   :  { %v829_v43 = vpack.c.b16 %v828_v17, %v827_v55  ;;  %v2829_v55 = vld [vmem:[#allocation10 + $0x20] sm:$0xff]  ;;  %v2828_v17 = vld [vmem:[#allocation10 + $0x18] sm:$0xff] }
 0x3e6   :  { %1276 = vmatpush.bf16.msrb.mxu0 %v2830_v60 }
 0x3e7   :  { %2488 = vmatmul.msk.bf16.vlgmr.msra.gmra.mxu3 %vm599_vm14, %v829_v43  ;;  %v933_v44 = vpop.xlane.xlu0 %932  ;;  %v2827_v43 = vld [vmem:[#allocation10 + $0x10] sm:$0xff] }
 0x3e8   :  { %v930_v6 = vpop.xlane.xlu1 %929  ;;  %3017 = vrcp.f32 %v933_v44  ;;  %v2826_v44 = vld [vmem:[#allocation10 + $0x8] sm:$0xff] }
 0x3e9   :  { %3019 = vrcp.f32 %v930_v6  ;;  %v2825_v6 = vld [vmem:[#allocation10] sm:$0xff] }
 0x3ea   :  { %1277 = vmatpush.bf16.msrb.mxu0 %v2829_v55 }
 0x3ee   :  { %v3018_v45 = vpop.eup %3017  ;;  %1278 = vmatpush.bf16.msrb.mxu0 %v2828_v17 }
 0x3ef   :  { %v3020_v46 = vpop.eup %3019  ;;  %v941_v5 = vmul.f32 %v3018_v45, %v3692_v22 }
 0x3f0   :  { %v940_v47 = vmul.f32 %v3020_v46, %v3694_v42  ;;  %v1070_v48 = vpop.xlane.xlu1 %1069 }
 0x3f1   :  { %v945_v14 = vpack.c.bf16 %v941_v5, %v941_v5 }
 0x3f2   :  { %v944_v49 = vpack.c.bf16 %v940_v47, %v940_v47  ;;  %1279 = vmatpush.bf16.msrb.mxu0 %v2827_v43 }
 0x3f3   :  { %v974_v27 = vunpack.c.l.b16 %v945_v14  ;;  %v671_v19 = vpop.f32.mrf.mxu3 }
 0x3f4   :  { %v973_v51 = vunpack.c.l.b16 %v944_v49 }
 0x3f6   :  { %v975_v32 = vpack.c.b16 %v974_v27, %v973_v51  ;;  %1280 = vmatpush.bf16.msrb.mxu0 %v2826_v44 }
 0x3f7   :  { %v1079_v22 = vpop.xlane.xlu0 %1078 }
 0x3f8   :  { %2492 = vmatmul.msk.bf16.vlgmr.msrb.gmra.mxu3 %vm599_vm14, %v975_v32  ;;  %v1073_v53 = vpop.xlane.xlu1 %1072 }
 0x3f9   :  { %3021 = vrcp.f32 %v1073_v53 }
 0x3fa   :  { %3023 = vrcp.f32 %v1070_v48  ;;  %1281 = vmatpush.bf16.msrb.mxu0 %v2825_v6 }
 0x3fb   :  { %3025 = vrcp.f32 %v1079_v22  ;;  %v673_v20 = vpop.f32.mrf.mxu3 }
 0x3ff   :  { %v3022_v54 = vpop.eup %3021 }
 0x400   :  { %v3024_v57 = vpop.eup %3023  ;;  %v1085_v58 = vmul.f32 %v3022_v54, %v3711_v59 }
 0x401   :  { %v1084_v40 = vmul.f32 %v3024_v57, %v3706_v50  ;;  %v3026_v3 = vpop.eup %3025 }
 0x402   :  { %v1089_v61 = vpack.c.bf16 %v1085_v58, %v1085_v58  ;;  %v1087_v8 = vmul.f32 %v3026_v3, %v3713_v37 }
 0x403   :  { %v1088_v42 = vpack.c.bf16 %v1084_v40, %v1084_v40  ;;  %v3746_v21 = vpop.f32.mrf.mxu3 }
 0x404   :  { %v1095_v62 = vunpack.c.l.b16 %v1089_v61  ;;  %v1091_v59 = vpack.c.bf16 %v1087_v8, %v1087_v8 }
 0x405   :  { %v1094_v63 = vunpack.c.l.b16 %v1088_v42 }
 0x406   :  { %v1120_v12 = vunpack.c.l.b16 %v1091_v59 }
 0x407   :  { %v1096_v7 = vpack.c.b16 %v1095_v62, %v1094_v63 }
 0x40b   :  { %v3749_v31 = vpop.f32.mrf.mxu3 }
 0x410   :  { %v1098_v0 = vpop.permute.xlu1 %1097  ;;  %v1076_v1 = vpop.xlane.xlu2 %1075 }
 0x411   :  { %3027 = vrcp.f32 %v1076_v1  ;;  %1110 = vmatpush.bf16.msrb.mxu2 %v1098_v0 }
 0x414   :  { %2495 = vmatmul.msk.bf16.vlgmr.msrb.gmra.mxu2 %vm599_vm14, %v1096_v7 }
 0x417   :  { %v3028_v38 = vpop.eup %3027 }
 0x418   :  { %v1086_v50 = vmul.f32 %v3028_v38, %v3720_v2  ;;  %v1123_v4 = vpop.permute.xlu1 %1122 }
 0x419   :  { %1135 = vmatpush.bf16.msra.mxu3 %v1123_v4 }
 0x41a   :  { %v1090_v11 = vpack.c.bf16 %v1086_v50, %v1086_v50 }
 0x41c   :  { %v1119_v18 = vunpack.c.l.b16 %v1090_v11 }
 0x41e   :  { %v1121_v13 = vpack.c.b16 %v1120_v12, %v1119_v18 }
 0x420   :  { %2496 = vmatmul.msk.bf16.vlgmr.msra.gmra.mxu3 %vm599_vm14, %v1121_v13  ;;  %v2951_v13 = vld [vmem:[#allocation11] ss:$0 sm:$0xff] }
 0x452   :  { %v820_v26 = vpop.f32.mrf.mxu2 }
 0x45a   :  { %v822_v37 = vpop.f32.mrf.mxu2 }
 0x45b   :  { %v2919_v25 = vpack.i.bf16 %v822_v37, %v820_v26  ;;  %v3101_v26 = vld [vmem:[#allocation2] sm:$0xff] }
 0x45d   :  { %2920 = vrot.lane.b32.xlu0 %v2919_v25, %s3403_s21 }
 0x462   :  { %v966_v2 = vpop.f32.mrf.mxu2 }
 0x46a   :  { %v845_v28 = vpop.f32.mrf.mxu3  ;;  %v968_v24 = vpop.f32.mrf.mxu2 }
 0x46b   :  { %v2924_v29 = vpack.i.bf16 %v968_v24, %v966_v2 }
 0x46d   :  { %2925 = vrot.lane.b32.xlu1 %v2924_v29, %s3394_s3  ;;  %v3103_v29 = vld [vmem:[#allocation2 + $0x10] sm:$0xff] }
 0x472   :  { %v847_v52 = vpop.f32.mrf.mxu3 }
 0x473   :  { %v2934_v30 = vpack.i.bf16 %v847_v52, %v845_v28 }
 0x475   :  { %2935 = vrot.lane.b32.xlu2 %v2934_v30, %s3403_s21 }
 0x47b   :  { %v991_v56 = vpop.f32.mrf.mxu3 }
 0x483   :  { %v993_v35 = vpop.f32.mrf.mxu3 }
 0x484   :  { %v2939_v9 = vpack.i.bf16 %v993_v35, %v991_v56 }
 0x497   :  { %v1112_v34 = vpop.f32.mrf.mxu2 }
 0x49f   :  { %v1114_v36 = vpop.f32.mrf.mxu2 }
 0x4a0   :  { %v2929_v39 = vpack.i.bf16 %v1114_v36, %v1112_v34  ;;  %v3104_v34 = vld [vmem:[#allocation2 + $0x18] sm:$0xff] }
 0x4a2   :  { %2930 = vrot.lane.b32.xlu1 %v2929_v39, %s3402_s4 }
 0x4a3   :  { %v1137_v23 = vpop.f32.mrf.mxu3 }
 0x4aa   :  { %2940 = vrot.lane.b32.xlu1 %v2939_v9, %s3394_s3  ;;  %s2367_s3 = sshll.u32 %s4257_s13, 4  ;;  %s2368_s3 = int_to_ptr.hbm [resolvable:$true] %s2367_s3 }
 0x4ab   :  { %v1139_v41 = vpop.f32.mrf.mxu3 }
 0x4ac   :  { %v2944_v15 = vpack.i.bf16 %v1139_v41, %v1137_v23 }
 0x4ae   :  { %2945 = vrot.lane.b32.xlu0 %v2944_v15, %s3402_s4 }
 0x4cf   :  { %v2921_v46 = vpop.permute.xlu0 %2920  ;;  %v2936_v61 = vpop.permute.xlu2 %2935 }
 0x4d0   :  { %v2923_v5 = vunpack.i.h.bf16 %v2921_v46  ;;  %v2922_v47 = vunpack.i.l.bf16 %v2921_v46  ;;  %v2938_v62 = vunpack.i.h.bf16 %v2936_v61  ;;  %v2937_v63 = vunpack.i.l.bf16 %v2936_v61  ;;  %v2857_v61 = vld [vmem:[#allocation16 + $0xc4] sm:$0xf] }
 0x4d2   :  { %v1191_v27 = vsel %vm548_vm13, %v673_v20, %v2923_v5  ;;  %v1190_v51 = vsel %vm548_vm13, %v671_v19, %v2922_v47  ;;  %v1193_v38 = vsel %vm548_vm13, %v3749_v31, %v2938_v62  ;;  %v1192_v59 = vsel %vm548_vm13, %v3746_v21, %v2937_v63  ;;  %v3102_v31 = vld [vmem:[#allocation2 + $0x8] sm:$0xff]  ;;  %v2863_v47 = vld [vmem:[#allocation16 + $0xec] sm:$0xf0]  ;;  %v2629_v62 = vld [vmem:[#allocation16 + $0xd0] sm:$0xf0] }
 0x4d3   :  { %v2643_v5 = vld [vmem:[#allocation16 + $0xe0] sm:$0xf]  ;;  %v2635_v63 = vld [vmem:[#allocation16 + $0xc8] sm:$0xf] }
 0x4df   :  { %v2926_v45 = vpop.permute.xlu1 %2925 }
 0x4e0   :  { %v2928_v48 = vunpack.i.h.bf16 %v2926_v45  ;;  %v2927_v14 = vunpack.i.l.bf16 %v2926_v45 }
 0x4e2   :  { %v1195_v54 = vsel %vm1194_vm15, %v1190_v51, %v2927_v14  ;;  %v1196_v57 = vsel %vm1194_vm15, %v1191_v27, %v2928_v48  ;;  %v2861_v48 = vld [vmem:[#allocation16 + $0xe4] sm:$0xf]  ;;  %v2644_v14 = vor.u32 %v2863_v47, %v2643_v5  ;;  %v2651_v27 = vld [vmem:[#allocation16 + $0xe8] sm:$0xf]  ;;  %v2864_v51 = vld [vmem:[#allocation16 + $0xf4] sm:$0xf0] }
 0x4e4   :  { %1597 = vmatpush.bf16.msrb.mxu1 %v2644_v14  ;;  %v2589_v14 = vld [vmem:[#allocation16 + $0x78] sm:$0xf0] }
 0x514   :  { %v2931_v49 = vpop.permute.xlu1 %2930 }
 0x515   :  { %v2933_v32 = vunpack.i.h.bf16 %v2931_v49  ;;  %v2932_v53 = vunpack.i.l.bf16 %v2931_v49  ;;  %v2645_v49 = vld [vmem:[#allocation16 + $0xf0] sm:$0xf0] }
 0x517   :  { %v1200_v58 = vsel %vm1199_vm0, %v1195_v54, %v2932_v53  ;;  %v1201_v40 = vsel %vm1199_vm0, %v1196_v57, %v2933_v32  ;;  %v2648_v32 = vor.u32 %v2861_v48, %v2645_v49  ;;  %v2652_v53 = vor.u32 %v2864_v51, %v2651_v27  ;;  %v2862_v54 = vld [vmem:[#allocation16 + $0xec] sm:$0xf]  ;;  %v2653_v57 = vld [vmem:[#allocation16 + $0xf8] sm:$0xf0]  ;;  %v2563_v27 = vld [vmem:[#allocation16 + $0x40] sm:$0xf] }
 0x518   :  { %v1204_v22 = vpack.c.bf16 %v1201_v40, %v1200_v58  ;;  %v2656_v58 = vor.u32 %v2862_v54, %v2653_v57  ;;  %v2627_v40 = vld [vmem:[#allocation16 + $0xc0] sm:$0xf]  ;;  %v2846_v48 = vld [vmem:[#allocation16 + $0x6c] sm:$0xf]  ;;  %v2843_v51 = vld [vmem:[#allocation16 + $0x4c] sm:$0xf0] }
 0x519   :  { %1616 = vmatpush.bf16.msra.mxu2 %v2648_v32  ;;  %1635 = vmatpush.bf16.msrb.mxu3 %v2652_v53  ;;  %v2592_v49 = vor.u32 %v2846_v48, %v2589_v14  ;;  %v2841_v32 = vld [vmem:[#allocation16 + $0x44] sm:$0xf]  ;;  %v2564_v53 = vor.u32 %v2843_v51, %v2563_v27  ;;  %v2565_v54 = vld [vmem:[#allocation16 + $0x50] sm:$0xf0]  ;;  %v2571_v57 = vld [vmem:[#allocation16 + $0x48] sm:$0xf] }
 0x51a   :  { %1282 = vmatmul.bf16.vlgmr.msrb.gmra.mxu0 %v1204_v22  ;;  %v2859_v22 = vld [vmem:[#allocation16 + $0xcc] sm:$0xf0] }
 0x51b   :  { %1654 = vmatpush.bf16.msra.mxu0 %v2656_v58  ;;  %v2844_v58 = vld [vmem:[#allocation16 + $0x54] sm:$0xf0] }
 0x51c   :  { %v2941_v42 = vpop.permute.xlu1 %2940 }
 0x51d   :  { %v2943_v0 = vunpack.i.h.bf16 %v2941_v42  ;;  %v2942_v1 = vunpack.i.l.bf16 %v2941_v42  ;;  %v2628_v42 = vor.u32 %v2859_v22, %v2627_v40  ;;  %v2568_v40 = vor.u32 %v2841_v32, %v2565_v54 }
 0x51e   :  { %v2572_v22 = vor.u32 %v2844_v58, %v2571_v57 }
 0x51f   :  { %v1197_v50 = vsel %vm1194_vm15, %v1192_v59, %v2942_v1  ;;  %v1198_v4 = vsel %vm1194_vm15, %v1193_v38, %v2943_v0  ;;  %v2860_v0 = vld [vmem:[#allocation16 + $0xd4] sm:$0xf0]  ;;  %v2632_v1 = vor.u32 %v2857_v61, %v2629_v62  ;;  %1598 = vmatpush.bf16.msrb.mxu1 %v2628_v42  ;;  %v2611_v59 = vld [vmem:[#allocation16 + $0xa0] sm:$0xf]  ;;  %v2842_v61 = vld [vmem:[#allocation16 + $0x4c] sm:$0xf] }
 0x520   :  { %v2946_v3 = vpop.permute.xlu0 %2945  ;;  %v2573_v42 = vld [vmem:[#allocation16 + $0x58] sm:$0xf0] }
 0x521   :  { %v2948_v7 = vunpack.i.h.bf16 %v2946_v3  ;;  %v2947_v8 = vunpack.i.l.bf16 %v2946_v3  ;;  %v2636_v3 = vor.u32 %v2860_v0, %v2635_v63  ;;  %1617 = vmatpush.bf16.msra.mxu2 %v2632_v1  ;;  %v2576_v62 = vor.u32 %v2842_v61, %v2573_v42  ;;  %v2547_v63 = vld [vmem:[#allocation16 + $0x20] sm:$0xf]  ;;  %v2839_v0 = vld [vmem:[#allocation16 + $0x2c] sm:$0xf0]  ;;  %v2837_v1 = vld [vmem:[#allocation16 + $0x24] sm:$0xf] }
 0x523   :  { %v1202_v11 = vsel %vm1199_vm0, %v1197_v50, %v2947_v8  ;;  %v1203_v12 = vsel %vm1199_vm0, %v1198_v4, %v2948_v7  ;;  %v2858_v7 = vld [vmem:[#allocation16 + $0xcc] sm:$0xf]  ;;  %v2637_v8 = vld [vmem:[#allocation16 + $0xd8] sm:$0xf0]  ;;  %1636 = vmatpush.bf16.msrb.mxu3 %v2636_v3  ;;  %v2855_v50 = vld [vmem:[#allocation16 + $0xac] sm:$0xf0]  ;;  %v2548_v3 = vor.u32 %v2839_v0, %v2547_v63 }
 0x524   :  { %v1205_v18 = vpack.c.bf16 %v1203_v12, %v1202_v11  ;;  %v2640_v38 = vor.u32 %v2858_v7, %v2637_v8  ;;  %v2853_v4 = vld [vmem:[#allocation16 + $0xa4] sm:$0xf]  ;;  %v2612_v11 = vor.u32 %v2855_v50, %v2611_v59  ;;  %v2613_v12 = vld [vmem:[#allocation16 + $0xb0] sm:$0xf0]  ;;  %v2555_v8 = vld [vmem:[#allocation16 + $0x28] sm:$0xf] }
 0x525   :  { %v2549_v7 = vld [vmem:[#allocation16 + $0x30] sm:$0xf0] }
 0x526   :  { %1655 = vmatpush.bf16.msra.mxu0 %v2640_v38  ;;  %1599 = vmatpush.bf16.msrb.mxu1 %v2612_v11  ;;  %v2840_v38 = vld [vmem:[#allocation16 + $0x34] sm:$0xf0]  ;;  %v2552_v50 = vor.u32 %v2837_v1, %v2549_v7  ;;  %v2838_v11 = vld [vmem:[#allocation16 + $0x2c] sm:$0xf]  ;;  %v2953_v1 = vld [vmem:[#allocation14] ss:$0 sm:$0xff] }
 0x52a   :  { %1287 = vmatmul.bf16.gmra.mxu0 %v1205_v18  ;;  %v2619_v18 = vld [vmem:[#allocation16 + $0xa8] sm:$0xf] }
 0x597   :  { %v1283_v19 = vpop.f32.mrf.mxu0 }
 0x598   :  { %v1284_v20 = vadd.f32 %v2951_v13, %v1283_v19  ;;  %v2616_v19 = vor.u32 %v2853_v4, %v2613_v12  ;;  %v2556_v4 = vor.u32 %v2840_v38, %v2555_v8  ;;  %v2557_v12 = vld [vmem:[#allocation16 + $0x38] sm:$0xf0] }
 0x59a   :  { %v3770_v37 = vadd.f32 %v3101_v26, %v1284_v20  ;;  %v2854_v26 = vld [vmem:[#allocation16 + $0xac] sm:$0xf]  ;;  %1618 = vmatpush.bf16.msra.mxu2 %v2616_v19  ;;  %v2531_v19 = vld [vmem:[#allocation16] sm:$0xf] }
 0x59c   :  { %1299 = vadd.xlane.f32.xlu1 %v3770_v37 }
 0x59f   :  { %v1285_v25 = vpop.f32.mrf.mxu0 }
 0x5a0   :  { %v1286_v21 = vadd.f32 %v2951_v13, %v1285_v25  ;;  %v2621_v25 = vld [vmem:[#allocation16 + $0xb8] sm:$0xf0] }
 0x5a2   :  { %v3773_v2 = vadd.f32 %v3102_v31, %v1286_v21  ;;  %v2624_v21 = vor.u32 %v2854_v26, %v2621_v25  ;;  %v2595_v31 = vld [vmem:[#allocation16 + $0x80] sm:$0xf]  ;;  %v2833_v26 = vld [vmem:[#allocation16 + $0x4] sm:$0xf] }
 0x5a4   :  { %1301 = vadd.xlane.f32.xlu0 %v3773_v2  ;;  %1656 = vmatpush.bf16.msra.mxu0 %v2624_v21 }
 0x5a7   :  { %v1288_v28 = vpop.f32.mrf.mxu0 }
 0x5a8   :  { %v1289_v24 = vadd.f32 %v2951_v13, %v1288_v28  ;;  %v2851_v28 = vld [vmem:[#allocation16 + $0x8c] sm:$0xf0] }
 0x5aa   :  { %v3776_v52 = vadd.f32 %v3103_v29, %v1289_v24  ;;  %v2849_v24 = vld [vmem:[#allocation16 + $0x84] sm:$0xf]  ;;  %v2596_v29 = vor.u32 %v2851_v28, %v2595_v31  ;;  %v2533_v31 = vld [vmem:[#allocation16 + $0x10] sm:$0xf0]  ;;  %v2539_v28 = vld [vmem:[#allocation16 + $0x8] sm:$0xf] }
 0x5ac   :  { %1303 = vadd.xlane.f32.xlu2 %v3776_v52  ;;  %1600 = vmatpush.bf16.msrb.mxu1 %v2596_v29  ;;  %v2836_v29 = vld [vmem:[#allocation16 + $0x14] sm:$0xf0] }
 0x5af   :  { %v1290_v30 = vpop.f32.mrf.mxu0 }
 0x5b0   :  { %v1291_v56 = vadd.f32 %v2951_v13, %v1290_v30  ;;  %v2856_v13 = vld [vmem:[#allocation16 + $0xb4] sm:$0xf0]  ;;  %v2597_v30 = vld [vmem:[#allocation16 + $0x90] sm:$0xf0] }
 0x5b1   :  { %v2620_v20 = vor.u32 %v2856_v13, %v2619_v18  ;;  %v2560_v13 = vor.u32 %v2838_v11, %v2557_v12 }
 0x5b2   :  { %v3779_v35 = vadd.f32 %v3104_v34, %v1291_v56  ;;  %v2603_v56 = vld [vmem:[#allocation16 + $0x88] sm:$0xf]  ;;  %v2852_v34 = vld [vmem:[#allocation16 + $0x94] sm:$0xf0] }
 0x5b3   :  { %1637 = vmatpush.bf16.msrb.mxu3 %v2620_v20  ;;  %v2835_v20 = vld [vmem:[#allocation16 + $0xc] sm:$0xf0] }
 0x5b4   :  { %1305 = vadd.xlane.f32.xlu1 %v3779_v35  ;;  %v2532_v21 = vor.u32 %v2835_v20, %v2531_v19 }
 0x60f   :  { %v1300_v36 = vpop.xlane.xlu1 %1299 }
 0x610   :  { %v1307_v39 = vmul.f32 %v1300_v36, %v3512_v10  ;;  %v2600_v36 = vor.u32 %v2849_v24, %v2597_v30  ;;  %v2536_v24 = vor.u32 %v2833_v26, %v2533_v31  ;;  %v2834_v30 = vld [vmem:[#allocation16 + $0xc] sm:$0xf] }
 0x612   :  { %v3784_v23 = vsub.f32 %v3770_v37, %v1307_v39  ;;  %v2604_v39 = vor.u32 %v2852_v34, %v2603_v56  ;;  %1619 = vmatpush.bf16.msra.mxu2 %v2600_v36  ;;  %v2541_v56 = vld [vmem:[#allocation16 + $0x18] sm:$0xf0]  ;;  %v2540_v34 = vor.u32 %v2836_v29, %v2539_v28  ;;  %v1427_v29 = vld [vmem:[%s4254_s10] sm:$0xf] }
 0x613   :  { %v2544_v36 = vor.u32 %v2834_v30, %v2541_v56  ;;  %v3819_v30 = vperm.slane %v1427_v29, 3  ;;  %v2872_v56 = vld [vmem:[#allocation17 + $0x38] sm:$0xff] }
 0x614   :  { %v1315_v9 = vmul.f32 %v3784_v23, %v3784_v23  ;;  %1638 = vmatpush.bf16.msrb.mxu3 %v2604_v39 }
 0x616   :  { %1319 = vadd.xlane.f32.xlu0 %v1315_v9  ;;  %v2850_v9 = vld [vmem:[#allocation16 + $0x8c] sm:$0xf] }
 0x617   :  { %v1302_v41 = vpop.xlane.xlu0 %1301 }
 0x618   :  { %v1308_v15 = vmul.f32 %v1302_v41, %v3512_v10  ;;  %v2605_v41 = vld [vmem:[#allocation16 + $0x98] sm:$0xf0] }
 0x61a   :  { %v3790_v16 = vsub.f32 %v3773_v2, %v1308_v15  ;;  %v2608_v15 = vor.u32 %v2850_v9, %v2605_v41 }
 0x61c   :  { %v1316_v33 = vmul.f32 %v3790_v16, %v3790_v16  ;;  %1657 = vmatpush.bf16.msra.mxu0 %v2608_v15 }
 0x61e   :  { %1321 = vadd.xlane.f32.xlu1 %v1316_v33  ;;  %v2579_v33 = vld [vmem:[#allocation16 + $0x60] sm:$0xf] }
 0x61f   :  { %v1304_v60 = vpop.xlane.xlu2 %1303 }
 0x620   :  { %v1309_v55 = vmul.f32 %v1304_v60, %v3512_v10  ;;  %v2847_v60 = vld [vmem:[#allocation16 + $0x6c] sm:$0xf0]  ;;  %1658 = vmatpush.bf16.msra.mxu0 %v2592_v49 }
 0x622   :  { %v3796_v17 = vsub.f32 %v3776_v52, %v1309_v55  ;;  %v2845_v55 = vld [vmem:[#allocation16 + $0x64] sm:$0xf] }
 0x624   :  { %v1317_v43 = vmul.f32 %v3796_v17, %v3796_v17  ;;  %1659 = vmatpush.bf16.msra.mxu0 %v2576_v62 }
 0x626   :  { %1323 = vadd.xlane.f32.xlu0 %v1317_v43  ;;  %v2580_v43 = vor.u32 %v2847_v60, %v2579_v33 }
 0x627   :  { %v1306_v44 = vpop.xlane.xlu1 %1305 }
 0x628   :  { %v1310_v6 = vmul.f32 %v1306_v44, %v3512_v10  ;;  %v2581_v44 = vld [vmem:[#allocation16 + $0x70] sm:$0xf0]  ;;  %1601 = vmatpush.bf16.msrb.mxu1 %v2580_v43  ;;  %1660 = vmatpush.bf16.msra.mxu0 %v2560_v13 }
 0x629   :  { %v2584_v5 = vor.u32 %v2845_v55, %v2581_v44 }
 0x62a   :  { %v3802_v45 = vsub.f32 %v3779_v35, %v1310_v6  ;;  %v2587_v6 = vld [vmem:[#allocation16 + $0x68] sm:$0xf] }
 0x62b   :  { %1620 = vmatpush.bf16.msra.mxu2 %v2584_v5 }
 0x62c   :  { %v1318_v46 = vmul.f32 %v3802_v45, %v3802_v45  ;;  %1602 = vmatpush.bf16.msrb.mxu1 %v2564_v53  ;;  %1661 = vmatpush.bf16.msra.mxu0 %v2544_v36 }
 0x62e   :  { %1325 = vadd.xlane.f32.xlu2 %v1318_v46  ;;  %v2848_v46 = vld [vmem:[#allocation16 + $0x74] sm:$0xf0] }
 0x62f   :  { %v2588_v47 = vor.u32 %v2848_v46, %v2587_v6  ;;  %1621 = vmatpush.bf16.msra.mxu2 %v2568_v40  ;;  %v2952_v40 = vld [vmem:[#allocation13] ss:$0 sm:$0xff] }
 0x630   :  { %1603 = vmatpush.bf16.msrb.mxu1 %v2548_v3 }
 0x631   :  { %1639 = vmatpush.bf16.msrb.mxu3 %v2588_v47 }
 0x633   :  { %1622 = vmatpush.bf16.msra.mxu2 %v2552_v50 }
 0x634   :  { %1604 = vmatpush.bf16.msrb.mxu1 %v2532_v21 }
 0x635   :  { %1640 = vmatpush.bf16.msrb.mxu3 %v2572_v22 }
 0x637   :  { %1623 = vmatpush.bf16.msra.mxu2 %v2536_v24 }
 0x638   :  { %2277 = vmatpush.bf16.msra.mxu1 %v2872_v56 }
 0x639   :  { %1641 = vmatpush.bf16.msrb.mxu3 %v2556_v4 }
 0x63d   :  { %1642 = vmatpush.bf16.msrb.mxu3 %v2540_v34  ;;  %v2896_v34 = vld [vmem:[#allocation17 + $0xf8] sm:$0xff] }
 0x63e   :  { %2334 = vmatpush.bf16.msrb.mxu0 %v2896_v34 }
 0x689   :  { %v1320_v59 = vpop.xlane.xlu0 %1319 }
 0x68a   :  { %v1327_v18 = vmul.f32 %v1320_v59, %v3512_v10 }
 0x68c   :  { %v1331_v25 = vadd.f32 1e-05, %v1327_v18 }
 0x68e   :  { %3029 = vrsqrt.f32 %v1331_v25  ;;  %vm1341_vm2 = vweird.f32 %v1331_v25 }
 0x691   :  { %v1322_v39 = vpop.xlane.xlu1 %1321 }
 0x692   :  { %v1328_v9 = vmul.f32 %v1322_v39, %v3512_v10 }
 0x694   :  { %v3030_v41 = vpop.eup %3029  ;;  %v1332_v15 = vadd.f32 1e-05, %v1328_v9 }
 0x695   :  { %v1336_v33 = vmul.f32 %v3030_v41, %v1331_v25  ;;  %vm1342_vm1 = vweird.f32 %v3030_v41 }
 0x696   :  { %3031 = vrsqrt.f32 %v1332_v15  ;;  %vm1343_vm3 = vmor %vm1341_vm2, %vm1342_vm1  ;;  %vm1351_vm5 = vweird.f32 %v1332_v15 }
 0x697   :  { %v1337_v60 = vmul.f32 %v3030_v41, %v1336_v33 }
 0x699   :  { %v1338_v55 = vmul.f32 0.5, %v1337_v60  ;;  %v1324_v43 = vpop.xlane.xlu0 %1323  ;;  %v3831_v60 = vperm.slane %v1427_v29, 2 }
 0x69a   :  { %v1329_v44 = vmul.f32 %v1324_v43, %v3512_v10 }
 0x69b   :  { %v1339_v6 = vsub.f32 1.5, %v1338_v55 }
 0x69c   :  { %v3032_v46 = vpop.eup %3031  ;;  %v1333_v5 = vadd.f32 1e-05, %v1329_v44 }
 0x69d   :  { %v1340_v47 = vmul.f32 %v3030_v41, %v1339_v6  ;;  %v1346_v48 = vmul.f32 %v3032_v46, %v1332_v15  ;;  %vm1352_vm4 = vweird.f32 %v3032_v46  ;;  %v3828_v15 = vperm.slane %v1427_v29, 1 }
 0x69e   :  { %3033 = vrsqrt.f32 %v1333_v5  ;;  %vm1353_vm6 = vmor %vm1351_vm5, %vm1352_vm4  ;;  %vm1361_vm8 = vweird.f32 %v1333_v5 }
 0x69f   :  { %v1347_v14 = vmul.f32 %v3032_v46, %v1346_v48  ;;  %v1344_v49 = vsel %vm1343_vm3, %v3030_v41, %v1340_v47  ;;  %v2871_v48 = vld [vmem:[#allocation17 + $0x30] sm:$0xff] }
 0x6a0   :  { %v1375_v57 = vmul.f32 %v1344_v49, %v3784_v23  ;;  %2278 = vmatpush.bf16.msra.mxu1 %v2871_v48  ;;  %v2869_v48 = vld [vmem:[#allocation17 + $0x20] sm:$0xff] }
 0x6a1   :  { %v1348_v27 = vmul.f32 0.5, %v1347_v14  ;;  %v1326_v51 = vpop.xlane.xlu2 %1325  ;;  %v2895_v14 = vld [vmem:[#allocation17 + $0xf0] sm:$0xff] }
 0x6a2   :  { %v1330_v32 = vmul.f32 %v1326_v51, %v3512_v10  ;;  %v1382_v0 = vmul.f32 %v2952_v40, %v1375_v57  ;;  %2335 = vmatpush.bf16.msrb.mxu0 %v2895_v14  ;;  %v2888_v57 = vld [vmem:[#allocation17 + $0xb8] sm:$0xff]  ;;  %v2893_v14 = vld [vmem:[#allocation17 + $0xe0] sm:$0xff] }
 0x6a3   :  { %v1349_v53 = vsub.f32 1.5, %v1348_v27  ;;  %2315 = vmatpush.bf16.msra.mxu3 %v2888_v57 }
 0x6a4   :  { %v3034_v54 = vpop.eup %3033  ;;  %v1334_v58 = vadd.f32 1e-05, %v1330_v32  ;;  %v1389_v38 = vadd.f32 %v2953_v1, %v1382_v0 }
 0x6a5   :  { %v1350_v22 = vmul.f32 %v3032_v46, %v1349_v53  ;;  %v1356_v61 = vmul.f32 %v3034_v54, %v1333_v5  ;;  %vm1362_vm7 = vweird.f32 %v3034_v54 }
 0x6a6   :  { %3035 = vrsqrt.f32 %v1334_v58  ;;  %vm1363_vm9 = vmor %vm1361_vm8, %vm1362_vm7  ;;  %vm1371_vm11 = vweird.f32 %v1334_v58 }
 0x6a7   :  { %v1354_v42 = vsel %vm1353_vm6, %v3032_v46, %v1350_v22  ;;  %v1357_v62 = vmul.f32 %v3034_v54, %v1356_v61 }
 0x6a8   :  { %v1376_v63 = vmul.f32 %v1354_v42, %v3790_v16  ;;  %v2870_v42 = vld [vmem:[#allocation17 + $0x28] sm:$0xff] }
 0x6a9   :  { %v1358_v3 = vmul.f32 0.5, %v1357_v62  ;;  %v2894_v62 = vld [vmem:[#allocation17 + $0xe8] sm:$0xff]  ;;  %2279 = vmatpush.bf16.msra.mxu1 %v2870_v42 }
 0x6aa   :  { %v1383_v10 = vmul.f32 %v2952_v40, %v1376_v63  ;;  %2336 = vmatpush.bf16.msrb.mxu0 %v2894_v62 }
 0x6ab   :  { %v1359_v7 = vsub.f32 1.5, %v1358_v3 }
 0x6ac   :  { %v3036_v8 = vpop.eup %3035  ;;  %v1390_v59 = vadd.f32 %v2953_v1, %v1383_v10 }
 0x6ad   :  { %v1360_v23 = vmul.f32 %v3034_v54, %v1359_v7  ;;  %v1366_v50 = vmul.f32 %v3036_v8, %v1334_v58  ;;  %vm1372_vm10 = vweird.f32 %v3036_v8  ;;  %2280 = vmatpush.bf16.msra.mxu1 %v2869_v48  ;;  %v2877_v48 = vld [vmem:[#allocation17 + $0x60] sm:$0xff] }
 0x6ae   :  { %v1393_v4 = vpack.c.bf16 %v1390_v59, %v1389_v38  ;;  %vm1373_vm12 = vmor %vm1371_vm11, %vm1372_vm10  ;;  %2337 = vmatpush.bf16.msrb.mxu0 %v2893_v14  ;;  %v2885_v14 = vld [vmem:[#allocation17 + $0xa0] sm:$0xff] }
 0x6af   :  { %v1367_v11 = vmul.f32 %v3036_v8, %v1366_v50  ;;  %v1364_v12 = vsel %vm1363_vm9, %v3034_v54, %v1360_v23  ;;  %v2880_v54 = vld [vmem:[#allocation17 + $0x78] sm:$0xff] }
 0x6b0   :  { %1605 = vmatmul.bf16.vlgmr.msrb.gmra.mxu1 %v1393_v4  ;;  %1624 = vmatmul.bf16.vlgmr.msra.gmra.mxu2 %v1393_v4  ;;  %v1377_v13 = vmul.f32 %v1364_v12, %v3796_v17  ;;  %v3817_v17 = vperm.slane %v1427_v29, 0 }
 0x6b1   :  { %v1368_v18 = vmul.f32 0.5, %v1367_v11  ;;  %1643 = vmatmul.bf16.vlgmr.msrb.gmra.mxu3 %v1393_v4  ;;  %1662 = vmatmul.bf16.vlgmr.msra.gmra.mxu0 %v1393_v4 }
 0x6b2   :  { %v1384_v25 = vmul.f32 %v2952_v40, %v1377_v13  ;;  %2296 = vmatpush.bf16.msrb.mxu2 %v2880_v54 }
 0x6b3   :  { %v1369_v16 = vsub.f32 1.5, %v1368_v18 }
 0x6b4   :  { %v1391_v31 = vadd.f32 %v2953_v1, %v1384_v25 }
 0x6b5   :  { %v1370_v19 = vmul.f32 %v3036_v8, %v1369_v16 }
 0x6b7   :  { %v1374_v20 = vsel %vm1373_vm12, %v3036_v8, %v1370_v19 }
 0x6b8   :  { %v1378_v26 = vmul.f32 %v1374_v20, %v3802_v45 }
 0x6ba   :  { %v1385_v21 = vmul.f32 %v2952_v40, %v1378_v26 }
 0x6bc   :  { %v1392_v28 = vadd.f32 %v2953_v1, %v1385_v21 }
 0x6be   :  { %v1394_v24 = vpack.c.bf16 %v1392_v28, %v1391_v31 }
 0x6c0   :  { %1610 = vmatmul.bf16.gmra.mxu1 %v1394_v24  ;;  %1629 = vmatmul.bf16.gmra.mxu2 %v1394_v24 }
 0x6c1   :  { %1648 = vmatmul.bf16.gmra.mxu3 %v1394_v24  ;;  %1667 = vmatmul.bf16.gmra.mxu0 %v1394_v24 }
 0x72d   :  { %v1606_v45 = vpop.f32.mrf.mxu1 }
 0x72e   :  { %v3822_v36 = vadd.f32 %v1606_v45, %v3817_v17  ;;  %v1663_v39 = vpop.f32.mrf.mxu0 }
 0x72f   :  { %v3825_v9 = vadd.f32 %v1663_v39, %v3819_v30  ;;  %v2879_v39 = vld [vmem:[#allocation17 + $0x70] sm:$0xff] }
 0x730   :  { %v2657_v41 = vmul.f32 -1.702, %v3822_v36  ;;  %2297 = vmatpush.bf16.msrb.mxu2 %v2879_v39 }
 0x731   :  { %v2660_v33 = vmul.f32 -1.702, %v3825_v9 }
 0x732   :  { %v1705_v55 = vmul.f32 1.442695, %v2657_v41  ;;  %v2887_v41 = vld [vmem:[#allocation17 + $0xb0] sm:$0xff] }
 0x733   :  { %v1711_v43 = vmul.f32 1.442695, %v2660_v33  ;;  %v1625_v44 = vpop.f32.mrf.mxu2  ;;  %2316 = vmatpush.bf16.msra.mxu3 %v2887_v41 }
 0x734   :  { %3037 = vpow2.f32 %v1705_v55  ;;  %v3834_v6 = vadd.f32 %v1625_v44, %v3828_v15  ;;  %v1644_v46 = vpop.f32.mrf.mxu3 }
 0x735   :  { %3039 = vpow2.f32 %v1711_v43  ;;  %v3837_v5 = vadd.f32 %v1644_v46, %v3831_v60  ;;  %v1608_v47 = vpop.f32.mrf.mxu1 }
 0x736   :  { %v2658_v49 = vmul.f32 -1.702, %v3834_v6  ;;  %v3841_v27 = vadd.f32 %v1608_v47, %v3817_v17  ;;  %v1665_v51 = vpop.f32.mrf.mxu0 }
 0x737   :  { %v2659_v32 = vmul.f32 -1.702, %v3837_v5  ;;  %v3845_v53 = vadd.f32 %v1665_v51, %v3819_v30 }
 0x738   :  { %v1707_v58 = vmul.f32 1.442695, %v2658_v49  ;;  %v2661_v40 = vmul.f32 -1.702, %v3841_v27 }
 0x739   :  { %v1709_v22 = vmul.f32 1.442695, %v2659_v32  ;;  %v2664_v61 = vmul.f32 -1.702, %v3845_v53 }
 0x73a   :  { %v3038_v63 = vpop.eup %3037  ;;  %3041 = vpow2.f32 %v1707_v58  ;;  %v1713_v0 = vmul.f32 1.442695, %v2661_v40  ;;  %v2878_v40 = vld [vmem:[#allocation17 + $0x68] sm:$0xff] }
 0x73b   :  { %v3040_v1 = vpop.eup %3039  ;;  %v3849_v3 = vadd.f32 1.0, %v3038_v63  ;;  %3043 = vpow2.f32 %v1709_v22  ;;  %v1719_v10 = vmul.f32 1.442695, %v2664_v61  ;;  %v1627_v7 = vpop.f32.mrf.mxu2  ;;  %v2886_v22 = vld [vmem:[#allocation17 + $0xa8] sm:$0xff]  ;;  %2298 = vmatpush.bf16.msrb.mxu2 %v2878_v40 }
 0x73c   :  { %v3851_v8 = vadd.f32 1.0, %v3040_v1  ;;  %3045 = vpow2.f32 %v1713_v0  ;;  %v3854_v38 = vadd.f32 %v1627_v7, %v3828_v15  ;;  %v1646_v20 = vpop.f32.mrf.mxu3  ;;  %2317 = vmatpush.bf16.msra.mxu3 %v2886_v22 }
 0x73d   :  { %3047 = vrcp.f32 %v3849_v3  ;;  %v1762_v25 = vand.u32 2147483647, %v3849_v3  ;;  %v1764_v28 = vand.u32 2147483648, %v3849_v3  ;;  %v1611_v29 = vpop.f32.mrf.mxu1  ;;  %v3880_v45 = vadd.f32 %v1646_v20, %v3831_v60 }
 0x73e   :  { %3049 = vrcp.f32 %v3851_v8  ;;  %v2662_v59 = vmul.f32 -1.702, %v3854_v38  ;;  %v1807_v55 = vand.u32 2147483647, %v3851_v8  ;;  %v1809_v43 = vand.u32 2147483648, %v3851_v8  ;;  %v1668_v32 = vpop.f32.mrf.mxu0 }
 0x73f   :  { %3051 = vpow2.f32 %v1719_v10  ;;  %vm1758_vm13 = vweird.f32 %v3849_v3  ;;  %v3891_v47 = vadd.f32 %v1611_v29, %v3817_v17  ;;  %vm3898_vm15 = vcmp.eq.f32.partialorder %v1762_v25, 8.507059e+37  ;;  %2299 = vmatpush.bf16.msrb.mxu2 %v2877_v48 }
 0x740   :  { %v3042_v23 = vpop.eup %3041  ;;  %v1715_v16 = vmul.f32 1.442695, %v2662_v59  ;;  %v1765_v57 = vor.u32 1.1754944e-38, %v1764_v28  ;;  %vm1803_vm0 = vweird.f32 %v3851_v8  ;;  %v2663_v58 = vmul.f32 -1.702, %v3880_v45  ;;  %2318 = vmatpush.bf16.msra.mxu3 %v2885_v14 }
 0x741   :  { %v3044_v50 = vpop.eup %3043  ;;  %v3859_v4 = vadd.f32 1.0, %v3042_v23  ;;  %vm3906_vm1 = vcmp.eq.f32.partialorder %v1807_v55, 8.507059e+37  ;;  %v1810_v62 = vor.u32 1.1754944e-38, %v1809_v43  ;;  %v2665_v59 = vmul.f32 -1.702, %v3891_v47 }
 0x742   :  { %v3046_v11 = vpop.eup %3045  ;;  %v3861_v12 = vadd.f32 1.0, %v3044_v50  ;;  %v3923_v23 = vadd.f32 %v1668_v32, %v3819_v30 }
 0x743   :  { %v3863_v18 = vpop.eup %3047  ;;  %3053 = vrcp.f32 %v3859_v4  ;;  %v3875_v24 = vadd.f32 1.0, %v3046_v11  ;;  %v1777_v11 = vand.u32 2147483647, %v3859_v4  ;;  %vm1773_vm7 = vweird.f32 %v3859_v4  ;;  %v1630_v32 = vpop.f32.mrf.mxu2 }
 0x744   :  { %v3866_v13 = vpop.eup %3049  ;;  %v1754_v19 = vmul.f32 %v3863_v18, %v3849_v3  ;;  %3055 = vrcp.f32 %v3861_v12  ;;  %vm1759_vm14 = vweird.f32 %v3863_v18 }
 0x745   :  { %v3052_v26 = vpop.eup %3051  ;;  %v1799_v21 = vmul.f32 %v3866_v13, %v3851_v8  ;;  %3057 = vpow2.f32 %v1715_v16  ;;  %v1822_v0 = vand.u32 2147483647, %v3875_v24  ;;  %vm3915_vm2 = vmor %vm1758_vm13, %vm1759_vm14  ;;  %vm1804_vm3 = vweird.f32 %v3866_v13  ;;  %v2892_v8 = vld [vmem:[#allocation17 + $0xd8] sm:$0xff]  ;;  %v1613_v22 = vpop.f32.mrf.mxu1 }
 0x746   :  { %v1755_v31 = vsub.f32 1.0, %v1754_v19  ;;  %v3877_v34 = vadd.f32 1.0, %v3052_v26  ;;  %3059 = vrcp.f32 %v3875_v24  ;;  %v1779_v16 = vand.u32 2147483648, %v3859_v4  ;;  %vm3943_vm6 = vmor %vm1803_vm0, %vm1804_vm3  ;;  %2338 = vmatpush.bf16.msrb.mxu0 %v2892_v8 }
 0x747   :  { %v1800_v56 = vsub.f32 1.0, %v1799_v21  ;;  %v1824_v19 = vand.u32 2147483648, %v3875_v24  ;;  %vm1818_vm5 = vweird.f32 %v3875_v24  ;;  %v1717_v26 = vmul.f32 1.442695, %v2663_v58 }
 0x748   :  { %v1756_v33 = vmul.f32 %v3863_v18, %v1755_v31  ;;  %3061 = vrcp.f32 %v3877_v34  ;;  %vm3953_vm8 = vcmp.eq.f32.partialorder %v1822_v0, 8.507059e+37  ;;  %vm1863_vm9 = vweird.f32 %v3877_v34  ;;  %v2891_v0 = vld [vmem:[#allocation17 + $0xd0] sm:$0xff] }
 0x749   :  { %v3886_v44 = vpop.eup %3053  ;;  %v1801_v46 = vmul.f32 %v3866_v13, %v1800_v56  ;;  %v2868_v56 = vld [vmem:[#allocation17 + $0x18] sm:$0xff]  ;;  %v1825_v43 = vor.u32 1.1754944e-38, %v1824_v19  ;;  %v1649_v19 = vpop.f32.mrf.mxu3 }
 0x74a   :  { %v1757_v49 = vadd.f32 %v3863_v18, %v1756_v33  ;;  %v1769_v51 = vmul.f32 %v3886_v44, %v3859_v4  ;;  %v3904_v61 = vpop.eup %3055  ;;  %vm1774_vm4 = vweird.f32 %v3886_v44  ;;  %2281 = vmatpush.bf16.msra.mxu1 %v2868_v56  ;;  %2339 = vmatpush.bf16.msrb.mxu0 %v2891_v0  ;;  %v2889_v0 = vld [vmem:[#allocation17 + $0xc0] sm:$0xff] }
 0x74b   :  { %v3058_v1 = vpop.eup %3057  ;;  %v1802_v7 = vadd.f32 %v3866_v13, %v1801_v46  ;;  %v3951_v31 = vmul.f32 %v3904_v61, %v3861_v12  ;;  %v1867_v46 = vand.u32 2147483647, %v3877_v34 }
 0x74c   :  { %v1770_v63 = vsub.f32 1.0, %v1769_v51  ;;  %v3925_v50 = vpop.eup %3059  ;;  %v1761_v3 = vsel %vm3915_vm2, %v3863_v18, %v1757_v49  ;;  %v3957_v29 = vadd.f32 1.0, %v3058_v1  ;;  %v1869_v51 = vand.u32 2147483648, %v3877_v34 }
 0x74d   :  { %v1814_v20 = vmul.f32 %v3925_v50, %v3875_v24  ;;  %v1766_v39 = vsel %vm3898_vm15, %v1765_v57, %v1761_v3  ;;  %v1806_v41 = vsel %vm3943_vm6, %v3866_v13, %v1802_v7  ;;  %vm1819_vm10 = vweird.f32 %v3925_v50  ;;  %vm4024_vm15 = vmor %vm1773_vm7, %vm1774_vm4 }
 0x74e   :  { %v3937_v25 = vpop.eup %3061  ;;  %v1771_v21 = vmul.f32 %v3886_v44, %v1770_v63  ;;  %3063 = vrcp.f32 %v3957_v29  ;;  %v3973_v54 = vmul.f32 %v1766_v39, %v3822_v36  ;;  %v1811_v57 = vsel %vm3906_vm1, %v1810_v62, %v1806_v41  ;;  %v2867_v63 = vld [vmem:[#allocation17 + $0x10] sm:$0xff]  ;;  %vm3988_vm12 = vmor %vm1818_vm5, %vm1819_vm10  ;;  %v2881_v39 = vld [vmem:[#allocation17 + $0x80] sm:$0xff] }
 0x74f   :  { %v1815_v33 = vsub.f32 1.0, %v1814_v20  ;;  %v1859_v55 = vmul.f32 %v3937_v25, %v3877_v34  ;;  %v1785_v40 = vsub.f32 1.0, %v3951_v31  ;;  %vm1864_vm11 = vweird.f32 %v3937_v25  ;;  %2282 = vmatpush.bf16.msra.mxu1 %v2867_v63  ;;  %v2876_v20 = vld [vmem:[#allocation17 + $0x58] sm:$0xff]  ;;  %v2865_v63 = vld [vmem:[#allocation17] sm:$0xff] }
 0x750   :  { %v3978_v58 = vadd.f32 %v3886_v44, %v1771_v21  ;;  %3065 = vpow2.f32 %v1717_v26  ;;  %vm3992_vm13 = vcmp.eq.f32.partialorder %v1867_v46, 8.507059e+37  ;;  %v1721_v62 = vmul.f32 1.442695, %v2665_v59  ;;  %v2884_v59 = vld [vmem:[#allocation17 + $0x98] sm:$0xff]  ;;  %vm4015_vm14 = vmor %vm1863_vm9, %vm1864_vm11  ;;  %2300 = vmatpush.bf16.msrb.mxu2 %v2876_v20  ;;  %v2873_v31 = vld [vmem:[#allocation17 + $0x40] sm:$0xff] }
 0x751   :  { %v1816_v49 = vmul.f32 %v3925_v50, %v1815_v33  ;;  %v1860_v13 = vsub.f32 1.0, %v1859_v55  ;;  %v2668_v7 = vmul.f32 -1.702, %v3923_v23  ;;  %v3998_v3 = vadd.f32 %v1630_v32, %v3828_v15  ;;  %v2890_v33 = vld [vmem:[#allocation17 + $0xc8] sm:$0xff]  ;;  %2319 = vmatpush.bf16.msra.mxu3 %v2884_v59 }
 0x752   :  { %v1870_v18 = vor.u32 1.1754944e-38, %v1869_v51  ;;  %v4005_v21 = vadd.f32 %v1613_v22, %v3817_v17  ;;  %3067 = vpow2.f32 %v1721_v62  ;;  %v2866_v17 = vld [vmem:[#allocation17 + $0x8] sm:$0xff]  ;;  %v4035_v46 = vadd.f32 %v1649_v19, %v3831_v60  ;;  %2340 = vmatpush.bf16.msrb.mxu0 %v2890_v33  ;;  %v1632_v33 = vpop.f32.mrf.mxu2 }
 0x753   :  { %v1817_v1 = vadd.f32 %v3925_v50, %v1816_v49  ;;  %v1861_v10 = vmul.f32 %v3937_v25, %v1860_v13  ;;  %v2666_v41 = vmul.f32 -1.702, %v3998_v3  ;;  %v1996_v48 = vmul.f32 %v1811_v57, %v3825_v9  ;;  %2283 = vmatpush.bf16.msra.mxu1 %v2866_v17  ;;  %v2883_v49 = vld [vmem:[#allocation17 + $0x90] sm:$0xff]  ;;  %v2874_v19 = vld [vmem:[#allocation17 + $0x48] sm:$0xff] }
 0x754   :  { %v4007_v56 = vpop.eup %3063  ;;  %v1776_v14 = vsel %vm4024_vm15, %v3886_v44, %v3978_v58  ;;  %v2669_v9 = vmul.f32 -1.702, %v4005_v21  ;;  %v1837_v57 = vand.u32 2147483647, %v3957_v29  ;;  %v1839_v44 = vand.u32 2147483648, %v3957_v29 }
 0x755   :  { %v1821_v24 = vsel %vm3988_vm12, %v3925_v50, %v1817_v1  ;;  %v1862_v26 = vadd.f32 %v3937_v25, %v1861_v10  ;;  %v1727_v50 = vmul.f32 1.442695, %v2668_v7  ;;  %v1723_v22 = vmul.f32 1.442695, %v2666_v41  ;;  %2320 = vmatpush.bf16.msra.mxu3 %v2883_v49 }
 0x756   :  { %v1826_v8 = vsel %vm3953_vm8, %v1825_v43, %v1821_v24  ;;  %v1829_v43 = vmul.f32 %v4007_v56, %v3957_v29  ;;  %v3066_v13 = vpop.eup %3065  ;;  %vm1834_vm0 = vweird.f32 %v4007_v56  ;;  %v1729_v36 = vmul.f32 1.442695, %v2669_v9  ;;  %2341 = vmatpush.bf16.msrb.mxu0 %v2889_v0 }
 0x757   :  { %v1997_v34 = vmul.f32 %v1826_v8, %v3841_v27  ;;  %v1866_v55 = vsel %vm4015_vm14, %v3937_v25, %v1862_v26  ;;  %3069 = vpow2.f32 %v1727_v50  ;;  %v2875_v25 = vld [vmem:[#allocation17 + $0x50] sm:$0xff]  ;;  %v4049_v58 = vadd.f32 1.0, %v3066_v13  ;;  %2284 = vmatpush.bf16.msra.mxu1 %v2865_v63 }
 0x758   :  { %v1871_v27 = vsel %vm3992_vm13, %v1870_v18, %v1866_v55  ;;  %v1830_v32 = vsub.f32 1.0, %v1829_v43  ;;  %2301 = vmatpush.bf16.msrb.mxu2 %v2875_v25  ;;  %v3068_v42 = vpop.eup %3067  ;;  %vm1778_vm1 = vcmp.eq.f32.partialorder %v1777_v11, 8.507059e+37  ;;  %v1780_v62 = vor.u32 1.1754944e-38, %v1779_v16  ;;  %v1670_v16 = vpop.f32.mrf.mxu0 }
 0x759   :  { %v2000_v51 = vmul.f32 %v1871_v27, %v3845_v53  ;;  %v2009_v1 = vpack.c.bf16 %v1997_v34, %v3973_v54  ;;  %v2667_v53 = vmul.f32 -1.702, %v4035_v46  ;;  %3071 = vrcp.f32 %v4049_v58  ;;  %v2882_v54 = vld [vmem:[#allocation17 + $0x88] sm:$0xff] }
 0x75a   :  { %v1831_v10 = vmul.f32 %v4007_v56, %v1830_v32  ;;  %vm1833_vm2 = vweird.f32 %v3957_v29  ;;  %v4061_v24 = vadd.f32 1.0, %v3068_v42  ;;  %3073 = vpow2.f32 %v1723_v22  ;;  %2321 = vmatpush.bf16.msra.mxu3 %v2882_v54 }
 0x75b   :  { %v2012_v7 = vpack.c.bf16 %v2000_v51, %v1996_v48  ;;  %v1781_v18 = vsel %vm1778_vm1, %v1780_v62, %v1776_v14  ;;  %v1786_v4 = vmul.f32 %v3904_v61, %v1785_v40  ;;  %vm1835_vm3 = vmor %vm1833_vm2, %vm1834_vm0  ;;  %v1840_v11 = vor.u32 1.1754944e-38, %v1839_v44  ;;  %2285 = vmatmul.bf16.vlgmr.msra.gmra.mxu1 %v2009_v1 }
 0x75c   :  { %v1832_v20 = vadd.f32 %v4007_v56, %v1831_v10  ;;  %3075 = vpow2.f32 %v1729_v36  ;;  %2302 = vmatpush.bf16.msrb.mxu2 %v2874_v19  ;;  %vm1838_vm4 = vcmp.eq.f32.partialorder %v1837_v57, 8.507059e+37  ;;  %v1725_v29 = vmul.f32 1.442695, %v2667_v53 }
 0x75d   :  { %v3070_v26 = vpop.eup %3069  ;;  %3077 = vrcp.f32 %v4061_v24  ;;  %2342 = vmatmul.bf16.vlgmr.msrb.gmra.mxu0 %v2012_v7  ;;  %v1994_v40 = vmul.f32 %v1781_v18, %v3834_v6  ;;  %v4075_v17 = vadd.f32 %v1670_v16, %v3819_v30  ;;  %vm1789_vm5 = vweird.f32 %v3904_v61 }
 0x75e   :  { %v1836_v59 = vsel %vm1835_vm3, %v4007_v56, %v1832_v20  ;;  %v4072_v41 = vadd.f32 1.0, %v3070_v26  ;;  %v1787_v34 = vadd.f32 %v3904_v61, %v1786_v4  ;;  %3079 = vpow2.f32 %v1725_v29  ;;  %2322 = vmatpush.bf16.msra.mxu3 %v2881_v39  ;;  %v1651_v4 = vpop.f32.mrf.mxu3 }
 0x75f   :  { %v1841_v8 = vsel %vm1838_vm4, %v1840_v11, %v1836_v59  ;;  %v3072_v56 = vpop.eup %3071  ;;  %vm1788_vm6 = vweird.f32 %v3861_v12  ;;  %v1794_v30 = vand.u32 2147483648, %v3861_v12  ;;  %v2672_v27 = vmul.f32 -1.702, %v4075_v17 }
 0x760   :  { %v1998_v50 = vmul.f32 %v1841_v8, %v3854_v38  ;;  %2303 = vmatpush.bf16.msrb.mxu2 %v2873_v31  ;;  %v3074_v28 = vpop.eup %3073  ;;  %v1844_v43 = vmul.f32 %v3072_v56, %v4049_v58  ;;  %v1792_v38 = vand.u32 2147483647, %v3861_v12  ;;  %3081 = vrcp.f32 %v4072_v41  ;;  %vm4092_vm7 = vmor %vm1788_vm6, %vm1789_vm5 }
 0x761   :  { %v4088_v25 = vadd.f32 %v1632_v33, %v3828_v15  ;;  %v1854_v13 = vand.u32 2147483648, %v4049_v58  ;;  %v4099_v51 = vadd.f32 1.0, %v3074_v28  ;;  %v1791_v15 = vsel %vm4092_vm7, %v3904_v61, %v1787_v34 }
 0x762   :  { %v2010_v55 = vpack.c.bf16 %v1998_v50, %v1994_v40  ;;  %v3076_v6 = vpop.eup %3075  ;;  %v1845_v14 = vsub.f32 1.0, %v1844_v43  ;;  %vm1849_vm8 = vweird.f32 %v3072_v56  ;;  %v1852_v9 = vand.u32 2147483647, %v4049_v58 }
 0x763   :  { %v4083_v48 = vpop.eup %3077  ;;  %v4101_v32 = vadd.f32 1.0, %v3076_v6  ;;  %vm1793_vm9 = vcmp.eq.f32.partialorder %v1792_v38, 8.507059e+37  ;;  %v1795_v57 = vor.u32 1.1754944e-38, %v1794_v30  ;;  %vm1848_vm10 = vweird.f32 %v4049_v58 }
 0x764   :  { %2304 = vmatmul.bf16.vlgmr.msrb.gmra.mxu2 %v2010_v55  ;;  %v1874_v12 = vmul.f32 %v4083_v48, %v4061_v24  ;;  %v1846_v22 = vmul.f32 %v3072_v56, %v1845_v14  ;;  %v3080_v63 = vpop.eup %3079  ;;  %v1735_v1 = vmul.f32 1.442695, %v2672_v27  ;;  %v2670_v10 = vmul.f32 -1.702, %v4088_v25  ;;  %vm1850_vm11 = vmor %vm1848_vm10, %vm1849_vm8 }
 0x765   :  { %3083 = vrcp.f32 %v4101_v32  ;;  %v1796_v53 = vsel %vm1793_vm9, %v1795_v57, %v1791_v15  ;;  %v1855_v36 = vor.u32 1.1754944e-38, %v1854_v13  ;;  %vm1853_vm12 = vcmp.eq.f32.partialorder %v1852_v9, 8.507059e+37 }
 0x766   :  { %v1875_v44 = vsub.f32 1.0, %v1874_v12  ;;  %v1847_v0 = vadd.f32 %v3072_v56, %v1846_v22  ;;  %3085 = vrcp.f32 %v4099_v51  ;;  %v4111_v61 = vpop.eup %3081  ;;  %v4114_v19 = vadd.f32 1.0, %v3080_v63 }
 0x767   :  { %v1995_v54 = vmul.f32 %v1796_v53, %v3837_v5  ;;  %3087 = vpow2.f32 %v1735_v1  ;;  %v1731_v20 = vmul.f32 1.442695, %v2670_v10  ;;  %v1919_v18 = vmul.f32 %v4111_v61, %v4072_v41 }
 0x768   :  { %v1851_v42 = vsel %vm1850_vm11, %v3072_v56, %v1847_v0  ;;  %v1876_v7 = vmul.f32 %v4083_v48, %v1875_v44  ;;  %vm1879_vm13 = vweird.f32 %v4083_v48  ;;  %3089 = vrcp.f32 %v4114_v19 }
 0x769   :  { %v1856_v62 = vsel %vm1853_vm12, %v1855_v36, %v1851_v42  ;;  %v1884_v29 = vand.u32 2147483648, %v4061_v24  ;;  %3091 = vpow2.f32 %v1731_v20  ;;  %v4129_v8 = vadd.f32 %v1651_v4, %v3831_v60 }
 0x76a   :  { %v1999_v58 = vmul.f32 %v1856_v62, %v3880_v45  ;;  %v1877_v59 = vadd.f32 %v4083_v48, %v1876_v7  ;;  %v1882_v45 = vand.u32 2147483647, %v4061_v24  ;;  %vm1878_vm14 = vweird.f32 %v4061_v24 }
 0x76b   :  { %v3084_v26 = vpop.eup %3083  ;;  %v1920_v31 = vsub.f32 1.0, %v1919_v18  ;;  %vm4132_vm15 = vmor %vm1878_vm14, %vm1879_vm13  ;;  %v1942_v33 = vand.u32 2147483647, %v4101_v32  ;;  %v1944_v28 = vand.u32 2147483648, %v4101_v32  ;;  %v2671_v60 = vmul.f32 -1.702, %v4129_v8 }
 0x76c   :  { %v2011_v11 = vpack.c.bf16 %v1999_v58, %v1995_v54  ;;  %v4120_v16 = vpop.eup %3085  ;;  %v1934_v5 = vmul.f32 %v3084_v26, %v4101_v32  ;;  %v1881_v24 = vsel %vm4132_vm15, %v4083_v48, %v1877_v59  ;;  %vm1939_vm0 = vweird.f32 %v3084_v26 }
 0x76d   :  { %v3088_v40 = vpop.eup %3087  ;;  %v1889_v56 = vmul.f32 %v4120_v16, %v4099_v51  ;;  %vm1883_vm1 = vcmp.eq.f32.partialorder %v1882_v45, 8.507059e+37  ;;  %v1885_v43 = vor.u32 1.1754944e-38, %v1884_v29  ;;  %v1733_v6 = vmul.f32 1.442695, %v2671_v60 }
 0x76e   :  { %2323 = vmatmul.bf16.vlgmr.msra.gmra.mxu3 %v2011_v11  ;;  %v1935_v39 = vsub.f32 1.0, %v1934_v5  ;;  %v4144_v55 = vadd.f32 1.0, %v3088_v40  ;;  %v4146_v38 = vpop.eup %3089  ;;  %v1921_v30 = vmul.f32 %v4111_v61, %v1920_v31  ;;  %vm1938_vm2 = vweird.f32 %v4101_v32 }
 0x76f   :  { %v3092_v27 = vpop.eup %3091  ;;  %v1886_v49 = vsel %vm1883_vm1, %v1885_v43, %v1881_v24  ;;  %v1890_v13 = vsub.f32 1.0, %v1889_v56  ;;  %vm1940_vm3 = vmor %vm1938_vm2, %vm1939_vm0  ;;  %v1945_v48 = vor.u32 1.1754944e-38, %v1944_v28  ;;  %vm1943_vm4 = vcmp.eq.f32.partialorder %v1942_v33, 8.507059e+37 }
 0x770   :  { %v1936_v34 = vmul.f32 %v3084_v26, %v1935_v39  ;;  %3093 = vrcp.f32 %v4144_v55  ;;  %v4151_v15 = vadd.f32 1.0, %v3092_v27  ;;  %v1927_v22 = vand.u32 2147483647, %v4072_v41 }
 0x771   :  { %3095 = vpow2.f32 %v1733_v6  ;;  %v2001_v57 = vmul.f32 %v1886_v49, %v3891_v47  ;;  %v1904_v32 = vmul.f32 %v4146_v38, %v4114_v19  ;;  %v1922_v63 = vadd.f32 %v4111_v61, %v1921_v30 }
 0x772   :  { %v1937_v14 = vadd.f32 %v3084_v26, %v1936_v34  ;;  %3097 = vrcp.f32 %v4151_v15  ;;  %vm1924_vm5 = vweird.f32 %v4111_v61  ;;  %v1891_v0 = vmul.f32 %v4120_v16, %v1890_v13 }
 0x773   :  { %v1929_v10 = vand.u32 2147483648, %v4072_v41  ;;  %vm1923_vm6 = vweird.f32 %v4072_v41  ;;  %vm4164_vm7 = vcmp.eq.f32.partialorder %v1927_v22, 8.507059e+37  ;;  %v1897_v62 = vand.u32 2147483647, %v4099_v51 }
 0x774   :  { %v1941_v12 = vsel %vm1940_vm3, %v3084_v26, %v1937_v14  ;;  %vm4169_vm8 = vmor %vm1923_vm6, %vm1924_vm5  ;;  %v1899_v7 = vand.u32 2147483648, %v4099_v51  ;;  %v1905_v54 = vsub.f32 1.0, %v1904_v32  ;;  %v1892_v20 = vadd.f32 %v4120_v16, %v1891_v0 }
 0x775   :  { %v1946_v9 = vsel %vm1943_vm4, %v1945_v48, %v1941_v12  ;;  %v1926_v41 = vsel %vm4169_vm8, %v4111_v61, %v1922_v63  ;;  %vm1894_vm9 = vweird.f32 %v4120_v16  ;;  %v1930_v4 = vor.u32 1.1754944e-38, %v1929_v10 }
 0x776   :  { %v2005_v44 = vmul.f32 %v1946_v9, %v4005_v21  ;;  %v3094_v1 = vpop.eup %3093  ;;  %v1987_v11 = vand.u32 2147483647, %v4144_v55  ;;  %v1989_v59 = vand.u32 2147483648, %v4144_v55  ;;  %vm1893_vm10 = vweird.f32 %v4099_v51 }
 0x777   :  { %v3096_v36 = vpop.eup %3095  ;;  %v1979_v21 = vmul.f32 %v3094_v1, %v4144_v55  ;;  %vm1984_vm11 = vweird.f32 %v3094_v1  ;;  %v1931_v61 = vsel %vm4164_vm7, %v1930_v4, %v1926_v41  ;;  %vm4189_vm12 = vmor %vm1893_vm10, %vm1894_vm9  ;;  %vm4193_vm13 = vcmp.eq.f32.partialorder %v1897_v62, 8.507059e+37 }
 0x778   :  { %v2013_v53 = vpack.c.bf16 %v2005_v44, %v2001_v57  ;;  %v4175_v58 = vadd.f32 1.0, %v3096_v36  ;;  %v3098_v18 = vpop.eup %3097  ;;  %v1900_v39 = vor.u32 1.1754944e-38, %v1899_v7  ;;  %v1906_v40 = vmul.f32 %v4146_v38, %v1905_v54  ;;  %v2954_v7 = vld [vmem:[%s4256_s12] ss:$0 sm:$0xff]  ;;  %s3404_s12 = smov [#allocation19]  }
 0x779   :  { %v1980_v26 = vsub.f32 1.0, %v1979_v21  ;;  %v1949_v45 = vmul.f32 %v3098_v18, %v4151_v15  ;;  %v1896_v51 = vsel %vm4189_vm12, %v4120_v16, %v1892_v20  ;;  %vm1983_vm14 = vweird.f32 %v4144_v55  ;;  %s2365_s2 = sshll.u32 %s3404_s12, 4  ;;  %s2366_s2 = int_to_ptr.vmem [resolvable:$true] %s2365_s2 }
 0x77a   :  { %2290 = vmatmul.bf16.gmra.mxu1 %v2013_v53  ;;  %3099 = vrcp.f32 %v4175_v58  ;;  %vm1909_vm15 = vweird.f32 %v4146_v38  ;;  %vm1985_vm0 = vmor %vm1983_vm14, %vm1984_vm11  ;;  %vm1988_vm1 = vcmp.eq.f32.partialorder %v1987_v11, 8.507059e+37  ;;  %v1990_v33 = vor.u32 1.1754944e-38, %v1989_v59 }
 0x77b   :  { %v1981_v5 = vmul.f32 %v3094_v1, %v1980_v26  ;;  %v1950_v56 = vsub.f32 1.0, %v1949_v45  ;;  %v1959_v28 = vand.u32 2147483648, %v4151_v15  ;;  %vm1954_vm2 = vweird.f32 %v3098_v18 }
 0x77c   :  { %v1957_v34 = vand.u32 2147483647, %v4151_v15  ;;  %v2004_v6 = vmul.f32 %v1931_v61, %v3923_v23  ;;  %v1901_v16 = vsel %vm4193_vm13, %v1900_v39, %v1896_v51  ;;  %v1907_v55 = vadd.f32 %v4146_v38, %v1906_v40 }
 0x77d   :  { %v1982_v50 = vadd.f32 %v3094_v1, %v1981_v5  ;;  %v1951_v24 = vmul.f32 %v3098_v18, %v1950_v56  ;;  %vm1953_vm3 = vweird.f32 %v4151_v15  ;;  %vm1908_vm4 = vweird.f32 %v4114_v19 }
 0x77e   :  { %v1912_v13 = vand.u32 2147483647, %v4114_v19  ;;  %v1914_v48 = vand.u32 2147483648, %v4114_v19  ;;  %vm1955_vm5 = vmor %vm1953_vm3, %vm1954_vm2  ;;  %v1960_v23 = vor.u32 1.1754944e-38, %v1959_v28  ;;  %vm1958_vm7 = vcmp.eq.f32.partialorder %v1957_v34, 8.507059e+37 }
 0x77f   :  { %v1986_v60 = vsel %vm1985_vm0, %v3094_v1, %v1982_v50  ;;  %v1952_v27 = vadd.f32 %v3098_v18, %v1951_v24  ;;  %vm4217_vm6 = vmor %vm1908_vm4, %vm1909_vm15  ;;  %v2002_v9 = vmul.f32 %v1901_v16, %v3998_v3  ;;  %v1974_v19 = vand.u32 2147483648, %v4175_v58 }
 0x780   :  { %v3100_v43 = vpop.eup %3099  ;;  %v1991_v30 = vsel %vm1988_vm1, %v1990_v33, %v1986_v60  ;;  %v1911_v57 = vsel %vm4217_vm6, %v4146_v38, %v1907_v55  ;;  %v1972_v0 = vand.u32 2147483647, %v4175_v58  ;;  %v1915_v1 = vor.u32 1.1754944e-38, %v1914_v48 }
 0x781   :  { %v2008_v14 = vmul.f32 %v1991_v30, %v4075_v17  ;;  %v1964_v49 = vmul.f32 %v3100_v43, %v4175_v58  ;;  %v1956_v17 = vsel %vm1955_vm5, %v3098_v18, %v1952_v27  ;;  %vm1969_vm8 = vweird.f32 %v3100_v43 }
 0x782   :  { %v1961_v32 = vsel %vm1958_vm7, %v1960_v23, %v1956_v17  ;;  %vm1913_vm9 = vcmp.eq.f32.partialorder %v1912_v13, 8.507059e+37  ;;  %vm1968_vm10 = vweird.f32 %v4175_v58  ;;  %v1975_v36 = vor.u32 1.1754944e-38, %v1974_v19 }
 0x783   :  { %v1965_v22 = vsub.f32 1.0, %v1964_v49  ;;  %v2016_v15 = vpack.c.bf16 %v2008_v14, %v2004_v6  ;;  %v2006_v44 = vmul.f32 %v1961_v32, %v4088_v25  ;;  %v1916_v53 = vsel %vm1913_vm9, %v1915_v1, %v1911_v57  ;;  %vm1970_vm11 = vmor %vm1968_vm10, %vm1969_vm8 }
 0x784   :  { %vm1973_vm12 = vcmp.eq.f32.partialorder %v1972_v0, 8.507059e+37  ;;  %v2003_v25 = vmul.f32 %v1916_v53, %v4035_v46 }
 0x785   :  { %v1966_v63 = vmul.f32 %v3100_v43, %v1965_v22  ;;  %2347 = vmatmul.bf16.gmra.mxu0 %v2016_v15  ;;  %v2014_v3 = vpack.c.bf16 %v2006_v44, %v2002_v9 }
 0x787   :  { %v1967_v10 = vadd.f32 %v3100_v43, %v1966_v63  ;;  %2309 = vmatmul.bf16.gmra.mxu2 %v2014_v3 }
 0x789   :  { %v1971_v38 = vsel %vm1970_vm11, %v3100_v43, %v1967_v10 }
 0x78a   :  { %v1976_v47 = vsel %vm1973_vm12, %v1975_v36, %v1971_v38 }
 0x78b   :  { %v2007_v21 = vmul.f32 %v1976_v47, %v4129_v8 }
 0x78d   :  { %v2015_v42 = vpack.c.bf16 %v2007_v21, %v2003_v25 }
 0x78f   :  { %2328 = vmatmul.bf16.gmra.mxu3 %v2015_v42 }
 0x7d8   :  { %v2286_v62 = vpop.f32.mrf.mxu1 }
 0x7d9   :  { %v2287_v58 = vadd.f32 %v2954_v7, %v2286_v62 }
 0x7da   :  { %v2343_v20 = vpop.f32.mrf.mxu0 }
 0x7e0   :  { %v2288_v26 = vpop.f32.mrf.mxu1 }
 0x7e1   :  { %v2289_v59 = vadd.f32 %v2954_v7, %v2288_v26 }
 0x7e2   :  { %v2345_v29 = vpop.f32.mrf.mxu0 }
 0x7e7   :  { %v2305_v54 = vpop.f32.mrf.mxu2 }
 0x7e8   :  { %v2306_v41 = vadd.f32 %v2305_v54, %v2287_v58 }
 0x7ef   :  { %v2307_v11 = vpop.f32.mrf.mxu2 }
 0x7f0   :  { %v2308_v8 = vadd.f32 %v2307_v11, %v2289_v59 }
 0x7f1   :  { %v2324_v18 = vpop.f32.mrf.mxu3 }
 0x7f2   :  { %v2325_v4 = vadd.f32 %v2324_v18, %v2306_v41 }
 0x7f4   :  { %v2344_v5 = vadd.f32 %v2343_v20, %v2325_v4 }
 0x7f6   :  { %v2353_v46 = vadd.f32 %v2344_v5, %v3770_v37 }
 0x7f7   :  { %v2291_v40 = vpop.f32.mrf.mxu1 }
 0x7f8   :  { %2357 = vst [vmem:[#allocation19] sm:$0xff] %v2353_v46  ;;  %v2292_v50 = vadd.f32 %v2954_v7, %v2291_v40 }
 0x7f9   :  { %v2326_v45 = vpop.f32.mrf.mxu3 }
 0x7fa   :  { %v2327_v61 = vadd.f32 %v2326_v45, %v2308_v8 }
 0x7fc   :  { %v2346_v31 = vadd.f32 %v2345_v29, %v2327_v61 }
 0x7fe   :  { %v2354_v39 = vadd.f32 %v2346_v31, %v3773_v2 }
 0x7ff   :  { %v2293_v33 = vpop.f32.mrf.mxu1 }
 0x800   :  { %2358 = vst [vmem:[#allocation19 + $0x8] sm:$0xff] %v2354_v39  ;;  %v2294_v43 = vadd.f32 %v2954_v7, %v2293_v33 }
 0x802   :  { %v2348_v28 = vpop.f32.mrf.mxu0 }
 0x80a   :  { %v2310_v51 = vpop.f32.mrf.mxu2  ;;  %v2350_v14 = vpop.f32.mrf.mxu0 }
 0x80b   :  { %v2311_v56 = vadd.f32 %v2310_v51, %v2292_v50 }
 0x812   :  { %v2329_v60 = vpop.f32.mrf.mxu3  ;;  %v2312_v34 = vpop.f32.mrf.mxu2 }
 0x813   :  { %v2330_v24 = vadd.f32 %v2329_v60, %v2311_v56  ;;  %v2313_v16 = vadd.f32 %v2312_v34, %v2294_v43 }
 0x815   :  { %v2349_v37 = vadd.f32 %v2348_v28, %v2330_v24 }
 0x817   :  { %v2355_v6 = vadd.f32 %v2349_v37, %v3776_v52 }
 0x819   :  { %2359 = vst [vmem:[#allocation19 + $0x10] sm:$0xff] %v2355_v6 }
 0x81a   :  { %v2331_v55 = vpop.f32.mrf.mxu3 }
 0x81b   :  { %v2332_v30 = vadd.f32 %v2331_v55, %v2313_v16 }
 0x81d   :  { %v2351_v2 = vadd.f32 %v2350_v14, %v2332_v30 }
 0x81f   :  { %v2356_v27 = vadd.f32 %v2351_v2, %v3779_v35 }
 0x821   :  { %2360 = vst [vmem:[#allocation19 + $0x18] sm:$0xff] %v2356_v27 }
 0x822   :  { %2373 = dma.vmem_to_hbm [thread:$0]  %s2366_s2, 512, %s2368_s3, [#allocation4], %s3390_s18, %s3390_s18, %s3391_s8  }
 0x823   :  { %3381 = dma.done.wait [#allocation4], 512  }
 0x824   :  { %3382 = vsyncadd [#allocation4], 4294966784 }
 0x825   :  { %2378 = vsyncpa [#allocation3], 1 }
 0x826   :  { %2379 = vsyncpa [#allocation6], 1 }
 0x827   :  { %2380 = vsyncpa [#allocation9], 1 }
 0x828   :  { %2381 = vsyncpa [#allocation12], 1 }
 0x829   :  { %2382 = vsyncpa [#allocation15], 1 }
 0x82a   :  { %2383 = vsyncpa [#allocation18], 1 }
 0x82b   :  { %2384 = vsyncpa [#allocation4], 1 }

</bundles_post_ra>
